<compile_context>
chip_gen: v7x
topology: tpu7x:2x2x1
jax: 0.10.0
libtpu: 0.0.40
codegen_flags: <defaults>
</compile_context>

<pallas_src>
import jax
import jax.numpy as jnp
import numpy as np
from jax import lax
from jax.experimental import pallas as pl
from jax.experimental.pallas import tpu as pltpu

HIDDEN = 64          # LSTM hidden size (model)
FC1 = 128            # fc1 out features (model)
NUM_CLASSES = 5      # fc2 out features (model)
HP = 128             # padded hidden / per-gate width (128-lane aligned)
OUT_PAD = 128        # lane-dense padded output width


def _round_up(x, m):
    return ((x + m - 1) // m) * m


def net_kernel(x_pre_ref, w_hh_ref, w_fc_ref, b_fc_ref, out_ref):
    """One batch tile of the full forward pass.

    x_pre_ref : (seq, B, 4*HP) f32  precomputed x_t*W_ih + b_ih + b_hh (gate-padded)
    w_hh_ref  : (HP, 4*HP)     bf16 recurrent weight, padded (zero rows/cols in pad)
    w_fc_ref  : (HP, OUT_PAD)  f32  folded fc2(fc1(.)) weight, padded
    b_fc_ref  : (1, OUT_PAD)   f32  folded bias, padded
    out_ref   : (B, OUT_PAD)   f32
    """
    seq = x_pre_ref.shape[0]
    B = x_pre_ref.shape[1]
    hp = w_hh_ref.shape[0]

    w_hh = w_hh_ref[...]                              # (HP, 4*HP) bf16, loaded once

    h = jnp.zeros((B, hp), jnp.float32)
    c = jnp.zeros((B, hp), jnp.float32)

    # Fully unrolled serial recurrence.  Padded lanes stay exactly zero:
    # padded gate inputs are 0 -> i=f=o=0.5, g=0 -> c_pad stays 0, h_pad stays 0.
    for t in range(seq):
        gates = x_pre_ref[t] + jnp.dot(h.astype(jnp.bfloat16), w_hh,
                                       preferred_element_type=jnp.float32)
        i = jax.nn.sigmoid(gates[:, 0 * hp:1 * hp])
        f = jax.nn.sigmoid(gates[:, 1 * hp:2 * hp])
        g = jnp.tanh(gates[:, 2 * hp:3 * hp])
        o = jax.nn.sigmoid(gates[:, 3 * hp:4 * hp])
        c = f * c + i * g
        h = o * jnp.tanh(c)

    # PyTorch Net feeds hidden[1] == c_n into fc1/fc2; fc1/fc2 folded into one affine.
    out = jnp.dot(c, w_fc_ref[...], preferred_element_type=jnp.float32) + b_fc_ref[...]
    out_ref[...] = out.astype(out_ref.dtype)


def _prepare_params(params):
    """Fold/pad the PyTorch-shaped parameters into the kernel layout."""
    w_ih, w_hh, b_ih, b_hh, fc1_w, fc1_b, fc2_w, fc2_b = params
    H = w_hh.shape[0]
    bias = b_ih + b_hh

    w_ih_p = jnp.zeros((1, 4 * HP), jnp.float32)
    bias_p = jnp.zeros((1, 4 * HP), jnp.float32)
    w_hh_p = jnp.zeros((HP, 4 * HP), jnp.float32)
    for g in range(4):                                 # gate order: i, f, g, o
        w_ih_p = w_ih_p.at[:, g * HP:g * HP + H].set(w_ih[:, g * H:(g + 1) * H])
        bias_p = bias_p.at[:, g * HP:g * HP + H].set(bias[:, g * H:(g + 1) * H])
        w_hh_p = w_hh_p.at[:H, g * HP:g * HP + H].set(w_hh[:, g * H:(g + 1) * H])

    # fc1 and fc2 have no nonlinearity between them -> exact linear fold.
    w_fc = fc1_w @ fc2_w                               # (H, 5)
    b_fc = fc1_b @ fc2_w + fc2_b                       # (1, 5)
    w_fc_p = jnp.zeros((HP, OUT_PAD), jnp.float32).at[:H, :NUM_CLASSES].set(w_fc)
    b_fc_p = jnp.zeros((1, OUT_PAD), jnp.float32).at[:, :NUM_CLASSES].set(b_fc)

    return w_ih_p, bias_p, w_hh_p.astype(jnp.bfloat16), w_fc_p, b_fc_p


def net_forward(x, params):
    """x: (seq, batch) float32 (time-major, pre-unsqueeze). Returns (batch, 5) f32."""
    seq, batch = x.shape
    w_ih_p, bias_p, w_hh_p, w_fc_p, b_fc_p = _prepare_params(params)

    b_blk = min(_round_up(batch, 8), 128)              # batch tile (multiple of 8)
    b_pad = _round_up(batch, b_blk)
    xp = jnp.zeros((seq, b_pad), jnp.float32).at[:, :batch].set(x.astype(jnp.float32))

    # Hoisted input projection for ALL timesteps (one vectorized pass, off the
    # recurrence critical path):  x_pre[t] = x_t * W_ih^T + (b_ih + b_hh), gate-padded.
    x_pre = xp[:, :, None] * w_ih_p[None, :, :] + bias_p[None, :, :]   # (seq, b_pad, 4*HP)

    g4 = 4 * HP
    out = pl.pallas_call(
        net_kernel,
        out_shape=jax.ShapeDtypeStruct((b_pad, OUT_PAD), jnp.float32),
        grid=(b_pad // b_blk,),
        in_specs=[
            pl.BlockSpec((seq, b_blk, g4), lambda b: (0, b, 0)),
            pl.BlockSpec((HP, g4), lambda b: (0, 0)),
            pl.BlockSpec((HP, OUT_PAD), lambda b: (0, 0)),
            pl.BlockSpec((1, OUT_PAD), lambda b: (0, 0)),
        ],
        out_specs=pl.BlockSpec((b_blk, OUT_PAD), lambda b: (b, 0)),
        compiler_params=pltpu.CompilerParams(dimension_semantics=("parallel",)),
    )(x_pre, w_hh_p, w_fc_p, b_fc_p)

    return out[:batch, :NUM_CLASSES]


def init_params(key):
    """Deterministic synthetic parameters with the shapes implied by Net.__init__."""
    ks = jax.random.split(key, 8)
    H = HIDDEN
    bound_lstm = 1.0 / np.sqrt(H)
    bound_fc1 = 1.0 / np.sqrt(H)
    bound_fc2 = 1.0 / np.sqrt(FC1)
    u = lambda k, shape, b: jax.random.uniform(k, shape, jnp.float32, -b, b)
    w_ih = u(ks[0], (1, 4 * H), bound_lstm)           # weight_ih_l0^T (input_size=1)
    w_hh = u(ks[1], (H, 4 * H), bound_lstm)           # weight_hh_l0^T
    b_ih = u(ks[2], (1, 4 * H), bound_lstm)
    b_hh = u(ks[3], (1, 4 * H), bound_lstm)
    fc1_w = u(ks[4], (H, FC1), bound_fc1)             # fc1.weight^T
    fc1_b = u(ks[5], (1, FC1), bound_fc1)
    fc2_w = u(ks[6], (FC1, NUM_CLASSES), bound_fc2)   # fc2.weight^T
    fc2_b = u(ks[7], (1, NUM_CLASSES), bound_fc2)
    return (w_ih, w_hh, b_ih, b_hh, fc1_w, fc1_b, fc2_w, fc2_b)


def ref_forward(x, params):
    """Pure-JAX f32 reference of the same forward pass (unpadded, unfolded)."""
    w_ih, w_hh, b_ih, b_hh, fc1_w, fc1_b, fc2_w, fc2_b = params
    seq, batch = x.shape
    H = HIDDEN

    def step(carry, x_t):
        h, c = carry
        gates = x_t[:, None] * w_ih + h @ w_hh + b_ih + b_hh
        i = jax.nn.sigmoid(gates[:, 0 * H:1 * H])
        f = jax.nn.sigmoid(gates[:, 1 * H:2 * H])
        g = jnp.tanh(gates[:, 2 * H:3 * H])
        o = jax.nn.sigmoid(gates[:, 3 * H:4 * H])
        c = f * c + i * g
        h = o * jnp.tanh(c)
        return (h, c), None

    (h, c), _ = lax.scan(step,
                         (jnp.zeros((batch, H), jnp.float32),
                          jnp.zeros((batch, H), jnp.float32)),
                         x.astype(jnp.float32))
    return (c @ fc1_w + fc1_b) @ fc2_w + fc2_b


if __name__ == "__main__":
    key = jax.random.PRNGKey(0)
    k_param, k_x = jax.random.split(key)

    SEQ, BATCH = 8, 4
    params = init_params(k_param)
    x = jax.random.normal(k_x, (SEQ, BATCH), jnp.float32)   # time-major (seq, batch)

    out = net_forward(x, params)
    out = jax.block_until_ready(out)

    ref = ref_forward(x, params)
    # Tolerance loosened vs. the pure-f32 version because W_hh is fed to the MXU in
    # bf16 (f32 accumulation, f32 h/c state); errors stay well below 1e-2 here.
    np.testing.assert_allclose(np.asarray(out), np.asarray(ref), rtol=2e-2, atol=2e-2)
    assert out.shape == (BATCH, NUM_CLASSES)

    print("KERNEL_OK")
</pallas_src>

<mosaic_0001>
module attributes {stable_mosaic.version = 11 : i64} {
  func.func @net_kernel(%arg0: i32, %arg1: memref<8x8x512xf32, #tpu.memory_space<vmem>>, %arg2: memref<128x512xbf16, #tpu.memory_space<vmem>>, %arg3: memref<128x128xf32, #tpu.memory_space<vmem>>, %arg4: memref<1x128xf32, #tpu.memory_space<vmem>>, %arg5: memref<8x128xf32, #tpu.memory_space<vmem>>) attributes {dimension_semantics = [#tpu.dimension_semantics<parallel>], iteration_bounds = array<i64: 1>, scalar_prefetch = 0 : i64, scratch_operands = 0 : i64, tpu.core_type = #tpu.core_type<tc>, window_params = [{transform_indices = @transform_0, window_bounds = array<i64: 8, 8, 512>}, {pipeline_mode = #tpu.pipeline_mode<synchronous>, transform_indices = @transform_1, window_bounds = array<i64: 128, 512>}, {pipeline_mode = #tpu.pipeline_mode<synchronous>, transform_indices = @transform_2, window_bounds = array<i64: 128, 128>}, {pipeline_mode = #tpu.pipeline_mode<synchronous>, transform_indices = @transform_3, window_bounds = array<i64: 1, 128>}, {transform_indices = @transform_4, window_bounds = array<i64: 8, 128>}]} {
    %c0 = arith.constant 0 : index
    %c0_0 = arith.constant 0 : index
    %0 = vector.load %arg2[%c0, %c0_0] : memref<128x512xbf16, #tpu.memory_space<vmem>>, vector<128x512xbf16>
    %cst = arith.constant 0.000000e+00 : f32
    %1 = vector.broadcast %cst : f32 to vector<8x128xf32>
    %cst_1 = arith.constant 0.000000e+00 : f32
    %2 = vector.broadcast %cst_1 : f32 to vector<8x128xf32>
    %c0_2 = arith.constant 0 : index
    %c0_3 = arith.constant 0 : index
    %c0_4 = arith.constant 0 : index
    %3 = vector.load %arg1[%c0_2, %c0_3, %c0_4] : memref<8x8x512xf32, #tpu.memory_space<vmem>>, vector<1x8x512xf32>
    %4 = vector.shape_cast %3 : vector<1x8x512xf32> to vector<8x512xf32>
    %5 = arith.truncf %1 : vector<8x128xf32> to vector<8x128xbf16>
    %cst_5 = arith.constant dense<0.000000e+00> : vector<8x512xf32>
    %6 = tpu.matmul %5, %0, %cst_5 {dimension_numbers = #tpu.dot_dimension_numbers<[1], [0], [0], [1], [0, 0, 1, 1], [], []>} : vector<8x128xbf16>, vector<128x512xbf16>, vector<8x512xf32> -> vector<8x512xf32>
    %7 = arith.addf %4, %6 : vector<8x512xf32>
    %8 = vector.extract_strided_slice %7 {offsets = [0, 0], sizes = [8, 128], strides = [1, 1]} : vector<8x512xf32> to vector<8x128xf32>
    %9 = arith.negf %8 : vector<8x128xf32>
    %10 = math.exp %9 : vector<8x128xf32>
    %cst_6 = arith.constant 1.000000e+00 : f32
    %11 = vector.broadcast %cst_6 : f32 to vector<8x128xf32>
    %12 = arith.addf %11, %10 : vector<8x128xf32>
    %13 = arith.divf %11, %12 : vector<8x128xf32>
    %14 = vector.extract_strided_slice %7 {offsets = [0, 128], sizes = [8, 128], strides = [1, 1]} : vector<8x512xf32> to vector<8x128xf32>
    %15 = arith.negf %14 : vector<8x128xf32>
    %16 = math.exp %15 : vector<8x128xf32>
    %cst_7 = arith.constant 1.000000e+00 : f32
    %17 = vector.broadcast %cst_7 : f32 to vector<8x128xf32>
    %18 = arith.addf %17, %16 : vector<8x128xf32>
    %19 = arith.divf %17, %18 : vector<8x128xf32>
    %20 = vector.extract_strided_slice %7 {offsets = [0, 256], sizes = [8, 128], strides = [1, 1]} : vector<8x512xf32> to vector<8x128xf32>
    %21 = math.tanh %20 : vector<8x128xf32>
    %22 = vector.extract_strided_slice %7 {offsets = [0, 384], sizes = [8, 128], strides = [1, 1]} : vector<8x512xf32> to vector<8x128xf32>
    %23 = arith.negf %22 : vector<8x128xf32>
    %24 = math.exp %23 : vector<8x128xf32>
    %cst_8 = arith.constant 1.000000e+00 : f32
    %25 = vector.broadcast %cst_8 : f32 to vector<8x128xf32>
    %26 = arith.addf %25, %24 : vector<8x128xf32>
    %27 = arith.divf %25, %26 : vector<8x128xf32>
    %28 = arith.mulf %19, %2 : vector<8x128xf32>
    %29 = arith.mulf %13, %21 : vector<8x128xf32>
    %30 = arith.addf %28, %29 : vector<8x128xf32>
    %31 = math.tanh %30 : vector<8x128xf32>
    %32 = arith.mulf %27, %31 : vector<8x128xf32>
    %c1 = arith.constant 1 : index
    %c0_9 = arith.constant 0 : index
    %c0_10 = arith.constant 0 : index
    %33 = vector.load %arg1[%c1, %c0_9, %c0_10] : memref<8x8x512xf32, #tpu.memory_space<vmem>>, vector<1x8x512xf32>
    %34 = vector.shape_cast %33 : vector<1x8x512xf32> to vector<8x512xf32>
    %35 = arith.truncf %32 : vector<8x128xf32> to vector<8x128xbf16>
    %cst_11 = arith.constant dense<0.000000e+00> : vector<8x512xf32>
    %36 = tpu.matmul %35, %0, %cst_11 {dimension_numbers = #tpu.dot_dimension_numbers<[1], [0], [0], [1], [0, 0, 1, 1], [], []>} : vector<8x128xbf16>, vector<128x512xbf16>, vector<8x512xf32> -> vector<8x512xf32>
    %37 = arith.addf %34, %36 : vector<8x512xf32>
    %38 = vector.extract_strided_slice %37 {offsets = [0, 0], sizes = [8, 128], strides = [1, 1]} : vector<8x512xf32> to vector<8x128xf32>
    %39 = arith.negf %38 : vector<8x128xf32>
    %40 = math.exp %39 : vector<8x128xf32>
    %cst_12 = arith.constant 1.000000e+00 : f32
    %41 = vector.broadcast %cst_12 : f32 to vector<8x128xf32>
    %42 = arith.addf %41, %40 : vector<8x128xf32>
    %43 = arith.divf %41, %42 : vector<8x128xf32>
    %44 = vector.extract_strided_slice %37 {offsets = [0, 128], sizes = [8, 128], strides = [1, 1]} : vector<8x512xf32> to vector<8x128xf32>
    %45 = arith.negf %44 : vector<8x128xf32>
    %46 = math.exp %45 : vector<8x128xf32>
    %cst_13 = arith.constant 1.000000e+00 : f32
    %47 = vector.broadcast %cst_13 : f32 to vector<8x128xf32>
    %48 = arith.addf %47, %46 : vector<8x128xf32>
    %49 = arith.divf %47, %48 : vector<8x128xf32>
    %50 = vector.extract_strided_slice %37 {offsets = [0, 256], sizes = [8, 128], strides = [1, 1]} : vector<8x512xf32> to vector<8x128xf32>
    %51 = math.tanh %50 : vector<8x128xf32>
    %52 = vector.extract_strided_slice %37 {offsets = [0, 384], sizes = [8, 128], strides = [1, 1]} : vector<8x512xf32> to vector<8x128xf32>
    %53 = arith.negf %52 : vector<8x128xf32>
    %54 = math.exp %53 : vector<8x128xf32>
    %cst_14 = arith.constant 1.000000e+00 : f32
    %55 = vector.broadcast %cst_14 : f32 to vector<8x128xf32>
    %56 = arith.addf %55, %54 : vector<8x128xf32>
    %57 = arith.divf %55, %56 : vector<8x128xf32>
    %58 = arith.mulf %49, %30 : vector<8x128xf32>
    %59 = arith.mulf %43, %51 : vector<8x128xf32>
    %60 = arith.addf %58, %59 : vector<8x128xf32>
    %61 = math.tanh %60 : vector<8x128xf32>
    %62 = arith.mulf %57, %61 : vector<8x128xf32>
    %c2 = arith.constant 2 : index
    %c0_15 = arith.constant 0 : index
    %c0_16 = arith.constant 0 : index
    %63 = vector.load %arg1[%c2, %c0_15, %c0_16] : memref<8x8x512xf32, #tpu.memory_space<vmem>>, vector<1x8x512xf32>
    %64 = vector.shape_cast %63 : vector<1x8x512xf32> to vector<8x512xf32>
    %65 = arith.truncf %62 : vector<8x128xf32> to vector<8x128xbf16>
    %cst_17 = arith.constant dense<0.000000e+00> : vector<8x512xf32>
    %66 = tpu.matmul %65, %0, %cst_17 {dimension_numbers = #tpu.dot_dimension_numbers<[1], [0], [0], [1], [0, 0, 1, 1], [], []>} : vector<8x128xbf16>, vector<128x512xbf16>, vector<8x512xf32> -> vector<8x512xf32>
    %67 = arith.addf %64, %66 : vector<8x512xf32>
    %68 = vector.extract_strided_slice %67 {offsets = [0, 0], sizes = [8, 128], strides = [1, 1]} : vector<8x512xf32> to vector<8x128xf32>
    %69 = arith.negf %68 : vector<8x128xf32>
    %70 = math.exp %69 : vector<8x128xf32>
    %cst_18 = arith.constant 1.000000e+00 : f32
    %71 = vector.broadcast %cst_18 : f32 to vector<8x128xf32>
    %72 = arith.addf %71, %70 : vector<8x128xf32>
    %73 = arith.divf %71, %72 : vector<8x128xf32>
    %74 = vector.extract_strided_slice %67 {offsets = [0, 128], sizes = [8, 128], strides = [1, 1]} : vector<8x512xf32> to vector<8x128xf32>
    %75 = arith.negf %74 : vector<8x128xf32>
    %76 = math.exp %75 : vector<8x128xf32>
    %cst_19 = arith.constant 1.000000e+00 : f32
    %77 = vector.broadcast %cst_19 : f32 to vector<8x128xf32>
    %78 = arith.addf %77, %76 : vector<8x128xf32>
    %79 = arith.divf %77, %78 : vector<8x128xf32>
    %80 = vector.extract_strided_slice %67 {offsets = [0, 256], sizes = [8, 128], strides = [1, 1]} : vector<8x512xf32> to vector<8x128xf32>
    %81 = math.tanh %80 : vector<8x128xf32>
    %82 = vector.extract_strided_slice %67 {offsets = [0, 384], sizes = [8, 128], strides = [1, 1]} : vector<8x512xf32> to vector<8x128xf32>
    %83 = arith.negf %82 : vector<8x128xf32>
    %84 = math.exp %83 : vector<8x128xf32>
    %cst_20 = arith.constant 1.000000e+00 : f32
    %85 = vector.broadcast %cst_20 : f32 to vector<8x128xf32>
    %86 = arith.addf %85, %84 : vector<8x128xf32>
    %87 = arith.divf %85, %86 : vector<8x128xf32>
    %88 = arith.mulf %79, %60 : vector<8x128xf32>
    %89 = arith.mulf %73, %81 : vector<8x128xf32>
    %90 = arith.addf %88, %89 : vector<8x128xf32>
    %91 = math.tanh %90 : vector<8x128xf32>
    %92 = arith.mulf %87, %91 : vector<8x128xf32>
    %c3 = arith.constant 3 : index
    %c0_21 = arith.constant 0 : index
    %c0_22 = arith.constant 0 : index
    %93 = vector.load %arg1[%c3, %c0_21, %c0_22] : memref<8x8x512xf32, #tpu.memory_space<vmem>>, vector<1x8x512xf32>
    %94 = vector.shape_cast %93 : vector<1x8x512xf32> to vector<8x512xf32>
    %95 = arith.truncf %92 : vector<8x128xf32> to vector<8x128xbf16>
    %cst_23 = arith.constant dense<0.000000e+00> : vector<8x512xf32>
    %96 = tpu.matmul %95, %0, %cst_23 {dimension_numbers = #tpu.dot_dimension_numbers<[1], [0], [0], [1], [0, 0, 1, 1], [], []>} : vector<8x128xbf16>, vector<128x512xbf16>, vector<8x512xf32> -> vector<8x512xf32>
    %97 = arith.addf %94, %96 : vector<8x512xf32>
    %98 = vector.extract_strided_slice %97 {offsets = [0, 0], sizes = [8, 128], strides = [1, 1]} : vector<8x512xf32> to vector<8x128xf32>
    %99 = arith.negf %98 : vector<8x128xf32>
    %100 = math.exp %99 : vector<8x128xf32>
    %cst_24 = arith.constant 1.000000e+00 : f32
    %101 = vector.broadcast %cst_24 : f32 to vector<8x128xf32>
    %102 = arith.addf %101, %100 : vector<8x128xf32>
    %103 = arith.divf %101, %102 : vector<8x128xf32>
    %104 = vector.extract_strided_slice %97 {offsets = [0, 128], sizes = [8, 128], strides = [1, 1]} : vector<8x512xf32> to vector<8x128xf32>
    %105 = arith.negf %104 : vector<8x128xf32>
    %106 = math.exp %105 : vector<8x128xf32>
    %cst_25 = arith.constant 1.000000e+00 : f32
    %107 = vector.broadcast %cst_25 : f32 to vector<8x128xf32>
    %108 = arith.addf %107, %106 : vector<8x128xf32>
    %109 = arith.divf %107, %108 : vector<8x128xf32>
    %110 = vector.extract_strided_slice %97 {offsets = [0, 256], sizes = [8, 128], strides = [1, 1]} : vector<8x512xf32> to vector<8x128xf32>
    %111 = math.tanh %110 : vector<8x128xf32>
    %112 = vector.extract_strided_slice %97 {offsets = [0, 384], sizes = [8, 128], strides = [1, 1]} : vector<8x512xf32> to vector<8x128xf32>
    %113 = arith.negf %112 : vector<8x128xf32>
    %114 = math.exp %113 : vector<8x128xf32>
    %cst_26 = arith.constant 1.000000e+00 : f32
    %115 = vector.broadcast %cst_26 : f32 to vector<8x128xf32>
    %116 = arith.addf %115, %114 : vector<8x128xf32>
    %117 = arith.divf %115, %116 : vector<8x128xf32>
    %118 = arith.mulf %109, %90 : vector<8x128xf32>
    %119 = arith.mulf %103, %111 : vector<8x128xf32>
    %120 = arith.addf %118, %119 : vector<8x128xf32>
    %121 = math.tanh %120 : vector<8x128xf32>
    %122 = arith.mulf %117, %121 : vector<8x128xf32>
    %c4 = arith.constant 4 : index
    %c0_27 = arith.constant 0 : index
    %c0_28 = arith.constant 0 : index
    %123 = vector.load %arg1[%c4, %c0_27, %c0_28] : memref<8x8x512xf32, #tpu.memory_space<vmem>>, vector<1x8x512xf32>
    %124 = vector.shape_cast %123 : vector<1x8x512xf32> to vector<8x512xf32>
    %125 = arith.truncf %122 : vector<8x128xf32> to vector<8x128xbf16>
    %cst_29 = arith.constant dense<0.000000e+00> : vector<8x512xf32>
    %126 = tpu.matmul %125, %0, %cst_29 {dimension_numbers = #tpu.dot_dimension_numbers<[1], [0], [0], [1], [0, 0, 1, 1], [], []>} : vector<8x128xbf16>, vector<128x512xbf16>, vector<8x512xf32> -> vector<8x512xf32>
    %127 = arith.addf %124, %126 : vector<8x512xf32>
    %128 = vector.extract_strided_slice %127 {offsets = [0, 0], sizes = [8, 128], strides = [1, 1]} : vector<8x512xf32> to vector<8x128xf32>
    %129 = arith.negf %128 : vector<8x128xf32>
    %130 = math.exp %129 : vector<8x128xf32>
    %cst_30 = arith.constant 1.000000e+00 : f32
    %131 = vector.broadcast %cst_30 : f32 to vector<8x128xf32>
    %132 = arith.addf %131, %130 : vector<8x128xf32>
    %133 = arith.divf %131, %132 : vector<8x128xf32>
    %134 = vector.extract_strided_slice %127 {offsets = [0, 128], sizes = [8, 128], strides = [1, 1]} : vector<8x512xf32> to vector<8x128xf32>
    %135 = arith.negf %134 : vector<8x128xf32>
    %136 = math.exp %135 : vector<8x128xf32>
    %cst_31 = arith.constant 1.000000e+00 : f32
    %137 = vector.broadcast %cst_31 : f32 to vector<8x128xf32>
    %138 = arith.addf %137, %136 : vector<8x128xf32>
    %139 = arith.divf %137, %138 : vector<8x128xf32>
    %140 = vector.extract_strided_slice %127 {offsets = [0, 256], sizes = [8, 128], strides = [1, 1]} : vector<8x512xf32> to vector<8x128xf32>
    %141 = math.tanh %140 : vector<8x128xf32>
    %142 = vector.extract_strided_slice %127 {offsets = [0, 384], sizes = [8, 128], strides = [1, 1]} : vector<8x512xf32> to vector<8x128xf32>
    %143 = arith.negf %142 : vector<8x128xf32>
    %144 = math.exp %143 : vector<8x128xf32>
    %cst_32 = arith.constant 1.000000e+00 : f32
    %145 = vector.broadcast %cst_32 : f32 to vector<8x128xf32>
    %146 = arith.addf %145, %144 : vector<8x128xf32>
    %147 = arith.divf %145, %146 : vector<8x128xf32>
    %148 = arith.mulf %139, %120 : vector<8x128xf32>
    %149 = arith.mulf %133, %141 : vector<8x128xf32>
    %150 = arith.addf %148, %149 : vector<8x128xf32>
    %151 = math.tanh %150 : vector<8x128xf32>
    %152 = arith.mulf %147, %151 : vector<8x128xf32>
    %c5 = arith.constant 5 : index
    %c0_33 = arith.constant 0 : index
    %c0_34 = arith.constant 0 : index
    %153 = vector.load %arg1[%c5, %c0_33, %c0_34] : memref<8x8x512xf32, #tpu.memory_space<vmem>>, vector<1x8x512xf32>
    %154 = vector.shape_cast %153 : vector<1x8x512xf32> to vector<8x512xf32>
    %155 = arith.truncf %152 : vector<8x128xf32> to vector<8x128xbf16>
    %cst_35 = arith.constant dense<0.000000e+00> : vector<8x512xf32>
    %156 = tpu.matmul %155, %0, %cst_35 {dimension_numbers = #tpu.dot_dimension_numbers<[1], [0], [0], [1], [0, 0, 1, 1], [], []>} : vector<8x128xbf16>, vector<128x512xbf16>, vector<8x512xf32> -> vector<8x512xf32>
    %157 = arith.addf %154, %156 : vector<8x512xf32>
    %158 = vector.extract_strided_slice %157 {offsets = [0, 0], sizes = [8, 128], strides = [1, 1]} : vector<8x512xf32> to vector<8x128xf32>
    %159 = arith.negf %158 : vector<8x128xf32>
    %160 = math.exp %159 : vector<8x128xf32>
    %cst_36 = arith.constant 1.000000e+00 : f32
    %161 = vector.broadcast %cst_36 : f32 to vector<8x128xf32>
    %162 = arith.addf %161, %160 : vector<8x128xf32>
    %163 = arith.divf %161, %162 : vector<8x128xf32>
    %164 = vector.extract_strided_slice %157 {offsets = [0, 128], sizes = [8, 128], strides = [1, 1]} : vector<8x512xf32> to vector<8x128xf32>
    %165 = arith.negf %164 : vector<8x128xf32>
    %166 = math.exp %165 : vector<8x128xf32>
    %cst_37 = arith.constant 1.000000e+00 : f32
    %167 = vector.broadcast %cst_37 : f32 to vector<8x128xf32>
    %168 = arith.addf %167, %166 : vector<8x128xf32>
    %169 = arith.divf %167, %168 : vector<8x128xf32>
    %170 = vector.extract_strided_slice %157 {offsets = [0, 256], sizes = [8, 128], strides = [1, 1]} : vector<8x512xf32> to vector<8x128xf32>
    %171 = math.tanh %170 : vector<8x128xf32>
    %172 = vector.extract_strided_slice %157 {offsets = [0, 384], sizes = [8, 128], strides = [1, 1]} : vector<8x512xf32> to vector<8x128xf32>
    %173 = arith.negf %172 : vector<8x128xf32>
    %174 = math.exp %173 : vector<8x128xf32>
    %cst_38 = arith.constant 1.000000e+00 : f32
    %175 = vector.broadcast %cst_38 : f32 to vector<8x128xf32>
    %176 = arith.addf %175, %174 : vector<8x128xf32>
    %177 = arith.divf %175, %176 : vector<8x128xf32>
    %178 = arith.mulf %169, %150 : vector<8x128xf32>
    %179 = arith.mulf %163, %171 : vector<8x128xf32>
    %180 = arith.addf %178, %179 : vector<8x128xf32>
    %181 = math.tanh %180 : vector<8x128xf32>
    %182 = arith.mulf %177, %181 : vector<8x128xf32>
    %c6 = arith.constant 6 : index
    %c0_39 = arith.constant 0 : index
    %c0_40 = arith.constant 0 : index
    %183 = vector.load %arg1[%c6, %c0_39, %c0_40] : memref<8x8x512xf32, #tpu.memory_space<vmem>>, vector<1x8x512xf32>
    %184 = vector.shape_cast %183 : vector<1x8x512xf32> to vector<8x512xf32>
    %185 = arith.truncf %182 : vector<8x128xf32> to vector<8x128xbf16>
    %cst_41 = arith.constant dense<0.000000e+00> : vector<8x512xf32>
    %186 = tpu.matmul %185, %0, %cst_41 {dimension_numbers = #tpu.dot_dimension_numbers<[1], [0], [0], [1], [0, 0, 1, 1], [], []>} : vector<8x128xbf16>, vector<128x512xbf16>, vector<8x512xf32> -> vector<8x512xf32>
    %187 = arith.addf %184, %186 : vector<8x512xf32>
    %188 = vector.extract_strided_slice %187 {offsets = [0, 0], sizes = [8, 128], strides = [1, 1]} : vector<8x512xf32> to vector<8x128xf32>
    %189 = arith.negf %188 : vector<8x128xf32>
    %190 = math.exp %189 : vector<8x128xf32>
    %cst_42 = arith.constant 1.000000e+00 : f32
    %191 = vector.broadcast %cst_42 : f32 to vector<8x128xf32>
    %192 = arith.addf %191, %190 : vector<8x128xf32>
    %193 = arith.divf %191, %192 : vector<8x128xf32>
    %194 = vector.extract_strided_slice %187 {offsets = [0, 128], sizes = [8, 128], strides = [1, 1]} : vector<8x512xf32> to vector<8x128xf32>
    %195 = arith.negf %194 : vector<8x128xf32>
    %196 = math.exp %195 : vector<8x128xf32>
    %cst_43 = arith.constant 1.000000e+00 : f32
    %197 = vector.broadcast %cst_43 : f32 to vector<8x128xf32>
    %198 = arith.addf %197, %196 : vector<8x128xf32>
    %199 = arith.divf %197, %198 : vector<8x128xf32>
    %200 = vector.extract_strided_slice %187 {offsets = [0, 256], sizes = [8, 128], strides = [1, 1]} : vector<8x512xf32> to vector<8x128xf32>
    %201 = math.tanh %200 : vector<8x128xf32>
    %202 = vector.extract_strided_slice %187 {offsets = [0, 384], sizes = [8, 128], strides = [1, 1]} : vector<8x512xf32> to vector<8x128xf32>
    %203 = arith.negf %202 : vector<8x128xf32>
    %204 = math.exp %203 : vector<8x128xf32>
    %cst_44 = arith.constant 1.000000e+00 : f32
    %205 = vector.broadcast %cst_44 : f32 to vector<8x128xf32>
    %206 = arith.addf %205, %204 : vector<8x128xf32>
    %207 = arith.divf %205, %206 : vector<8x128xf32>
    %208 = arith.mulf %199, %180 : vector<8x128xf32>
    %209 = arith.mulf %193, %201 : vector<8x128xf32>
    %210 = arith.addf %208, %209 : vector<8x128xf32>
    %211 = math.tanh %210 : vector<8x128xf32>
    %212 = arith.mulf %207, %211 : vector<8x128xf32>
    %c7 = arith.constant 7 : index
    %c0_45 = arith.constant 0 : index
    %c0_46 = arith.constant 0 : index
    %213 = vector.load %arg1[%c7, %c0_45, %c0_46] : memref<8x8x512xf32, #tpu.memory_space<vmem>>, vector<1x8x512xf32>
    %214 = vector.shape_cast %213 : vector<1x8x512xf32> to vector<8x512xf32>
    %215 = arith.truncf %212 : vector<8x128xf32> to vector<8x128xbf16>
    %cst_47 = arith.constant dense<0.000000e+00> : vector<8x512xf32>
    %216 = tpu.matmul %215, %0, %cst_47 {dimension_numbers = #tpu.dot_dimension_numbers<[1], [0], [0], [1], [0, 0, 1, 1], [], []>} : vector<8x128xbf16>, vector<128x512xbf16>, vector<8x512xf32> -> vector<8x512xf32>
    %217 = arith.addf %214, %216 : vector<8x512xf32>
    %218 = vector.extract_strided_slice %217 {offsets = [0, 0], sizes = [8, 128], strides = [1, 1]} : vector<8x512xf32> to vector<8x128xf32>
    %219 = arith.negf %218 : vector<8x128xf32>
    %220 = math.exp %219 : vector<8x128xf32>
    %cst_48 = arith.constant 1.000000e+00 : f32
    %221 = vector.broadcast %cst_48 : f32 to vector<8x128xf32>
    %222 = arith.addf %221, %220 : vector<8x128xf32>
    %223 = arith.divf %221, %222 : vector<8x128xf32>
    %224 = vector.extract_strided_slice %217 {offsets = [0, 128], sizes = [8, 128], strides = [1, 1]} : vector<8x512xf32> to vector<8x128xf32>
    %225 = arith.negf %224 : vector<8x128xf32>
    %226 = math.exp %225 : vector<8x128xf32>
    %cst_49 = arith.constant 1.000000e+00 : f32
    %227 = vector.broadcast %cst_49 : f32 to vector<8x128xf32>
    %228 = arith.addf %227, %226 : vector<8x128xf32>
    %229 = arith.divf %227, %228 : vector<8x128xf32>
    %230 = vector.extract_strided_slice %217 {offsets = [0, 256], sizes = [8, 128], strides = [1, 1]} : vector<8x512xf32> to vector<8x128xf32>
    %231 = math.tanh %230 : vector<8x128xf32>
    %232 = arith.mulf %229, %210 : vector<8x128xf32>
    %233 = arith.mulf %223, %231 : vector<8x128xf32>
    %234 = arith.addf %232, %233 : vector<8x128xf32>
    %c0_50 = arith.constant 0 : index
    %c0_51 = arith.constant 0 : index
    %235 = vector.load %arg3[%c0_50, %c0_51] : memref<128x128xf32, #tpu.memory_space<vmem>>, vector<128x128xf32>
    %cst_52 = arith.constant dense<0.000000e+00> : vector<8x128xf32>
    %236 = tpu.matmul %234, %235, %cst_52 {dimension_numbers = #tpu.dot_dimension_numbers<[1], [0], [0], [1], [0, 0, 1, 1], [], []>} : vector<8x128xf32>, vector<128x128xf32>, vector<8x128xf32> -> vector<8x128xf32>
    %c0_53 = arith.constant 0 : index
    %c0_54 = arith.constant 0 : index
    %237 = vector.load %arg4[%c0_53, %c0_54] : memref<1x128xf32, #tpu.memory_space<vmem>>, vector<1x128xf32>
    %238 = vector.broadcast %237 : vector<1x128xf32> to vector<8x128xf32>
    %239 = arith.addf %236, %238 : vector<8x128xf32>
    %c0_55 = arith.constant 0 : index
    %c0_56 = arith.constant 0 : index
    %240 = vector.load %arg5[%c0_55, %c0_56] : memref<8x128xf32, #tpu.memory_space<vmem>>, vector<8x128xf32>
    tpu.vector_store %arg5[%c0_55, %c0_56], %239 {strides = array<i32>} : memref<8x128xf32, #tpu.memory_space<vmem>>, vector<8x128xf32>,
    return
  }
  func.func @transform_0(%arg0: i32) -> (i32, i32, i32) {
    %c0_i32 = arith.constant 0 : i32
    %c0_i32_0 = arith.constant 0 : i32
    %c0_i32_1 = arith.constant 0 : i32
    return %c0_i32, %arg0, %c0_i32_0 : i32, i32, i32
  }
  func.func @transform_1(%arg0: i32) -> (i32, i32) {
    %c0_i32 = arith.constant 0 : i32
    %c0_i32_0 = arith.constant 0 : i32
    %c0_i32_1 = arith.constant 0 : i32
    return %c0_i32, %c0_i32_0 : i32, i32
  }
  func.func @transform_2(%arg0: i32) -> (i32, i32) {
    %c0_i32 = arith.constant 0 : i32
    %c0_i32_0 = arith.constant 0 : i32
    %c0_i32_1 = arith.constant 0 : i32
    return %c0_i32, %c0_i32_0 : i32, i32
  }
  func.func @transform_3(%arg0: i32) -> (i32, i32) {
    %c0_i32 = arith.constant 0 : i32
    %c0_i32_0 = arith.constant 0 : i32
    %c0_i32_1 = arith.constant 0 : i32
    return %c0_i32, %c0_i32_0 : i32, i32
  }
  func.func @transform_4(%arg0: i32) -> (i32, i32) {
    %c0_i32 = arith.constant 0 : i32
    %c0_i32_0 = arith.constant 0 : i32
    return %arg0, %c0_i32 : i32, i32
  }
}

</mosaic_0001>

<bundles_post_ra>
// kernel: tpu_custom_call.1
= control target key start
LH: loop header
LB: loop body
LE: loop exit
PB: predicated region body
PF: predicated region fallthrough
CT: control target
= control target key end

     0   :  { %9 = vsyncpa [#allocation3], 0  ;;  %s2143_s0 = inlined_call_operand.hbm [shape: f32[8,8,512], index: 0, kind: input, shape index: {}]   ;;  %s2144_s1 = inlined_call_operand.hbm [shape: bf16[128,512], index: 1, kind: input, shape index: {}]   ;;  %s2145_s2 = inlined_call_operand.hbm [shape: f32[128,128], index: 2, kind: input, shape index: {}]   ;;  %s2146_s3 = inlined_call_operand.vmem [shape: f32[1,128], index: 3, kind: input, shape index: {}]   ;;  %s2147_s4 = inlined_call_operand.hbm [shape: f32[8,128], index: 4, kind: output, shape index: {}]  }
   0x1   :  { %10 = vsyncpa [#allocation6], 0 }
   0x2   :  { %11 = vsyncpa [#allocation4], 0  ;;  %s1718_s15 = smov [#allocation5]   ;;  %s1624_s19 = scalar_lea.hbm %s2144_s1, 4096 }
   0x3   :  { %s29_s16 = sshll.u32 %s1718_s15, 4  ;;  %p1625_p0 = scmp.ne.s32.totalorder %s2144_s1, %s1624_s19  ;;  %s30_s16 = int_to_ptr.vmem [resolvable:$true] %s29_s16 }
   0x4   :  { %p1628_p1 = scmp.lt.u32.totalorder %s1624_s19, %s2144_s1 }
   0x6   :  { %p1630_p2 = pnand %p1628_p1, %p1625_p0 }
   0x8   :  { %1633 = shalt.err (!%p1630_p2)
}
   0x9   :  { %s1634_s24 = scalar_lea.vmem %s30_s16, 4096  ;;  %p1639_p4 = scmp.lt.s32.totalorder %s30_s16, %s30_s16 }
   0xa   :  { %p1635_p3 = scmp.ne.s32.totalorder %s30_s16, %s1634_s24  ;;  %p1640_p5 = scmp.lt.s32.totalorder %s1634_s24, %s1634_s24 }
   0xc   :  { %p1641_p6 = por %p1640_p5, %p1639_p4 }
   0xe   :  { %p1642_p7 = pnand %p1641_p6, %p1635_p3 }
  0x10   :  { %1645 = shalt.err (!%p1642_p7)
}
  0x11   :  { %s1719_s25 = smov 256   ;;  %s1720_s26 = smov 16  }
  0x12   :  { %35 = dma.hbm_to_vmem [thread:$0]  %s2144_s1, 4096, %s30_s16, [#allocation6], %s1719_s25, %s1719_s25, %s1720_s26  }
  0x13   :  { %s1721_s29 = smov [#allocation2]   ;;  %s1646_s7 = scalar_lea.hbm %s2143_s0, 4096 }
  0x14   :  { %s17_s30 = sshll.u32 %s1721_s29, 4  ;;  %p1647_p8 = scmp.ne.s32.totalorder %s2143_s0, %s1646_s7  ;;  %s18_s30 = int_to_ptr.vmem [resolvable:$true] %s17_s30 }
  0x15   :  { %p1650_p9 = scmp.lt.u32.totalorder %s1646_s7, %s2143_s0 }
  0x17   :  { %p1652_p10 = pnand %p1650_p9, %p1647_p8 }
  0x19   :  { %1655 = shalt.err (!%p1652_p10)
}
  0x1a   :  { %s1656_s12 = scalar_lea.vmem %s18_s30, 4096  ;;  %p1661_p12 = scmp.lt.s32.totalorder %s18_s30, %s18_s30 }
  0x1b   :  { %p1657_p11 = scmp.ne.s32.totalorder %s18_s30, %s1656_s12  ;;  %p1662_p13 = scmp.lt.s32.totalorder %s1656_s12, %s1656_s12 }
  0x1d   :  { %p1663_p0 = por %p1662_p13, %p1661_p12 }
  0x1f   :  { %p1664_p1 = pnand %p1663_p0, %p1657_p11 }
  0x21   :  { %1667 = shalt.err (!%p1664_p1)
}
  0x22   :  { %s1722_s1 = smov 512   ;;  %s1723_s13 = smov 32  }
  0x23   :  { %23 = dma.hbm_to_vmem [thread:$0]  %s2143_s0, 4096, %s18_s30, [#allocation3], %s1722_s1, %s1722_s1, %s1723_s13  }
  0x24   :  { %s1724_s16 = smov [#allocation7]   ;;  %s1668_s20 = scalar_lea.hbm %s2145_s2, 2048 }
  0x25   :  { %s41_s17 = sshll.u32 %s1724_s16, 4  ;;  %p1669_p2 = scmp.ne.s32.totalorder %s2145_s2, %s1668_s20  ;;  %s42_s17 = int_to_ptr.vmem [resolvable:$true] %s41_s17 }
  0x26   :  { %p1672_p3 = scmp.lt.u32.totalorder %s1668_s20, %s2145_s2 }
  0x28   :  { %p1674_p4 = pnand %p1672_p3, %p1669_p2 }
  0x2a   :  { %1677 = shalt.err (!%p1674_p4)
}
  0x2b   :  { %s1678_s25 = scalar_lea.vmem %s42_s17, 2048  ;;  %p1683_p6 = scmp.lt.s32.totalorder %s42_s17, %s42_s17 }
  0x2c   :  { %p1679_p5 = scmp.ne.s32.totalorder %s42_s17, %s1678_s25  ;;  %p1684_p7 = scmp.lt.s32.totalorder %s1678_s25, %s1678_s25 }
  0x2e   :  { %p1685_p8 = por %p1684_p7, %p1683_p6 }
  0x30   :  { %p1686_p9 = pnand %p1685_p8, %p1679_p5 }
  0x32   :  { %1689 = shalt.err (!%p1686_p9)
}
  0x33   :  { %s1725_s0 = smov 128   ;;  %s1726_s26 = smov 8  }
  0x34   :  { %47 = dma.hbm_to_vmem [thread:$0]  %s2145_s2, 2048, %s42_s17, [#allocation6], %s1725_s0, %s1725_s0, %s1726_s26  }
  0x35   :  { %1712 = dma.done.wait [#allocation3], 4096  }
  0x36   :  { %1713 = vsyncadd [#allocation3], 4294963200 }
  0x37   :  { %1714 = dma.done.wait [#allocation6], 6144  }
  0x38   :  { %1715 = vsyncadd [#allocation6], 4294961152  ;;  %v1727_v0 = vmov 0   ;;  %v1795_v1 = vld [vmem:[#allocation5 + $0x4] ss:$16 sps:$4 sm:$0xff]   ;;  %v93_v34 = vld [vmem:[#allocation2 + $0x8] sm:$0xff] }
  0x39   :  { %288 = vmatprep.mubr.bf16.mxu0 %v1727_v0  ;;  %329 = vmatprep.mubr.bf16.mxu1 %v1727_v0  ;;  %v1797_v2 = vld [vmem:[#allocation5] ss:$16 sps:$4 sm:$0xff]   ;;  %v1800_v3 = vld [vmem:[#allocation5 + $0x24] ss:$16 sps:$4 sm:$0xff]   ;;  %v1808_v6 = vld [vmem:[#allocation5 + $0xc] ss:$16 sps:$4 sm:$0xff]  }
  0x3a   :  { %256 = vmatprep.subr.bf16.mxu0 %v1795_v1  ;;  %v1803_v4 = vld [vmem:[#allocation5 + $0x20] ss:$16 sps:$4 sm:$0xff]   ;;  %v1806_v5 = vld [vmem:[#allocation5 + $0x44] ss:$16 sps:$4 sm:$0xff]   ;;  %v1810_v7 = vld [vmem:[#allocation5 + $0x8] ss:$16 sps:$4 sm:$0xff]   ;;  %297 = vmatprep.subr.bf16.mxu1 %v1808_v6 }
  0x3b   :  { %257 = vmatpush1.bf16.msra.mxu0 %v1797_v2  ;;  %v1813_v8 = vld [vmem:[#allocation5 + $0x40] ss:$16 sps:$4 sm:$0xff]   ;;  %v1817_v9 = vld [vmem:[#allocation5 + $0x64] ss:$16 sps:$4 sm:$0xff]   ;;  %298 = vmatpush1.bf16.msra.mxu1 %v1810_v7  ;;  %v1820_v10 = vld [vmem:[#allocation5 + $0x2c] ss:$16 sps:$4 sm:$0xff]  }
  0x3c   :  { %258 = vmatprep.subr.bf16.mxu0 %v1800_v3  ;;  %v1822_v11 = vld [vmem:[#allocation5 + $0x28] ss:$16 sps:$4 sm:$0xff]   ;;  %299 = vmatprep.subr.bf16.mxu1 %v1820_v10  ;;  %v1826_v12 = vld [vmem:[#allocation5 + $0x60] ss:$16 sps:$4 sm:$0xff]   ;;  %v1828_v13 = vld [vmem:[#allocation5 + $0x84] ss:$16 sps:$4 sm:$0xff]  }
  0x3d   :  { %v1830_v14 = vld [vmem:[#allocation5 + $0x4c] ss:$16 sps:$4 sm:$0xff]   ;;  %v1834_v15 = vld [vmem:[#allocation5 + $0x48] ss:$16 sps:$4 sm:$0xff]   ;;  %v1840_v17 = vld [vmem:[#allocation5 + $0x80] ss:$16 sps:$4 sm:$0xff]  }
  0x3e   :  { %v1837_v16 = vld [vmem:[#allocation5 + $0x6c] ss:$16 sps:$4 sm:$0xff]   ;;  %v1843_v18 = vld [vmem:[#allocation5 + $0xa4] ss:$16 sps:$4 sm:$0xff]   ;;  %v1846_v19 = vld [vmem:[#allocation5 + $0x68] ss:$16 sps:$4 sm:$0xff]  }
  0x3f   :  { %259 = vmatpush1.bf16.msra.mxu0 %v1803_v4  ;;  %300 = vmatpush1.bf16.msra.mxu1 %v1822_v11  ;;  %v1849_v20 = vld [vmem:[#allocation5 + $0x8c] ss:$16 sps:$4 sm:$0xff]   ;;  %v1852_v21 = vld [vmem:[#allocation5 + $0xa0] ss:$16 sps:$4 sm:$0xff]   ;;  %v1854_v22 = vld [vmem:[#allocation5 + $0xc4] ss:$16 sps:$4 sm:$0xff]  }
  0x40   :  { %260 = vmatprep.subr.bf16.mxu0 %v1806_v5  ;;  %301 = vmatprep.subr.bf16.mxu1 %v1830_v14  ;;  %v1858_v23 = vld [vmem:[#allocation5 + $0x88] ss:$16 sps:$4 sm:$0xff]   ;;  %v1861_v24 = vld [vmem:[#allocation5 + $0xac] ss:$16 sps:$4 sm:$0xff]   ;;  %v1864_v25 = vld [vmem:[#allocation5 + $0xc0] ss:$16 sps:$4 sm:$0xff]  }
  0x41   :  { %v1867_v26 = vld [vmem:[#allocation5 + $0xe4] ss:$16 sps:$4 sm:$0xff]   ;;  %v1870_v27 = vld [vmem:[#allocation5 + $0xa8] ss:$16 sps:$4 sm:$0xff]   ;;  %v1873_v28 = vld [vmem:[#allocation5 + $0xcc] ss:$16 sps:$4 sm:$0xff]  }
  0x42   :  { %v1876_v29 = vld [vmem:[#allocation5 + $0xe0] ss:$16 sps:$4 sm:$0xff]   ;;  %v1880_v30 = vld [vmem:[#allocation5 + $0xc8] ss:$16 sps:$4 sm:$0xff]   ;;  %v1883_v31 = vld [vmem:[#allocation5 + $0xec] ss:$16 sps:$4 sm:$0xff]  }
  0x43   :  { %261 = vmatpush1.bf16.msra.mxu0 %v1813_v8  ;;  %302 = vmatpush1.bf16.msra.mxu1 %v1834_v15  ;;  %v1887_v32 = vld [vmem:[#allocation5 + $0xe8] ss:$16 sps:$4 sm:$0xff]   ;;  %v92_v33 = vld [vmem:[#allocation2] sm:$0xff]  ;;  %v94_v49 = vld [vmem:[#allocation2 + $0x10] sm:$0xff]  ;;  %vm1729_vm0 = vmmov 0   ;;  %s1731_s30 = smov [#allocation8]  }
  0x44   :  { %262 = vmatprep.subr.bf16.mxu0 %v1817_v9  ;;  %303 = vmatprep.subr.bf16.mxu1 %v1837_v16  ;;  %v95_v43 = vld [vmem:[#allocation2 + $0x18] sm:$0xff]  ;;  %s1267_s5 = sshll.u32 %s1731_s30, 4  ;;  %s1268_s5 = int_to_ptr.vmem [resolvable:$true] %s1267_s5 }
  0x45   :  { %s1690_s6 = scalar_lea.vmem %s1268_s5, 128  ;;  %p1695_p11 = scmp.lt.s32.totalorder %s1268_s5, %s1268_s5 }
  0x46   :  { %p1691_p10 = scmp.ne.s32.totalorder %s1268_s5, %s1690_s6  ;;  %p1696_p12 = scmp.lt.s32.totalorder %s1690_s6, %s1690_s6 }
  0x47   :  { %263 = vmatpush1.bf16.msra.mxu0 %v1826_v12  ;;  %304 = vmatpush1.bf16.msra.mxu1 %v1846_v19 }
  0x48   :  { %264 = vmatprep.subr.bf16.mxu0 %v1828_v13  ;;  %305 = vmatprep.subr.bf16.mxu1 %v1849_v20  ;;  %p1697_p13 = por %p1696_p12, %p1695_p11 }
  0x4a   :  { %p1698_p0 = pnand %p1697_p13, %p1691_p10 }
  0x4b   :  { %265 = vmatpush1.bf16.msra.mxu0 %v1840_v17  ;;  %306 = vmatpush1.bf16.msra.mxu1 %v1858_v23 }
  0x4c   :  { %266 = vmatprep.subr.bf16.mxu0 %v1843_v18  ;;  %307 = vmatprep.subr.bf16.mxu1 %v1861_v24 }
  0x4f   :  { %267 = vmatpush1.bf16.msra.mxu0 %v1852_v21  ;;  %308 = vmatpush1.bf16.msra.mxu1 %v1870_v27 }
  0x50   :  { %268 = vmatprep.subr.bf16.mxu0 %v1854_v22  ;;  %309 = vmatprep.subr.bf16.mxu1 %v1873_v28 }
  0x53   :  { %269 = vmatpush1.bf16.msra.mxu0 %v1864_v25  ;;  %310 = vmatpush1.bf16.msra.mxu1 %v1880_v30 }
  0x54   :  { %270 = vmatprep.subr.bf16.mxu0 %v1867_v26  ;;  %311 = vmatprep.subr.bf16.mxu1 %v1883_v31 }
  0x57   :  { %271 = vmatpush1.bf16.msra.mxu0 %v1876_v29  ;;  %312 = vmatpush1.bf16.msra.mxu1 %v1887_v32 }
  0x58   :  { %372 = vmatprep.subr.bf16.mxu0 %v1795_v1  ;;  %413 = vmatprep.subr.bf16.mxu1 %v1808_v6 }
  0x5a   :  { %289 = vmatmul.mubr.bf16.vlgmr.msra.gmra.mrb[0].mxu0 %v1727_v0  ;;  %330 = vmatmul.mubr.bf16.vlgmr.msra.gmra.mrb[0].mxu1 %v1727_v0 }
  0x5b   :  { %373 = vmatpush1.bf16.msra.mxu0 %v1797_v2  ;;  %404 = vmatprep.mubr.bf16.mxu0 %v1727_v0 }
  0x5c   :  { %374 = vmatprep.subr.bf16.mxu0 %v1800_v3  ;;  %414 = vmatpush1.bf16.msra.mxu1 %v1810_v7 }
  0x5d   :  { %415 = vmatprep.subr.bf16.mxu1 %v1820_v10  ;;  %445 = vmatprep.mubr.bf16.mxu1 %v1727_v0 }
  0x5f   :  { %375 = vmatpush1.bf16.msra.mxu0 %v1803_v4 }
  0x60   :  { %376 = vmatprep.subr.bf16.mxu0 %v1806_v5  ;;  %416 = vmatpush1.bf16.msra.mxu1 %v1822_v11 }
  0x61   :  { %417 = vmatprep.subr.bf16.mxu1 %v1830_v14 }
  0x63   :  { %377 = vmatpush1.bf16.msra.mxu0 %v1813_v8 }
  0x64   :  { %378 = vmatprep.subr.bf16.mxu0 %v1817_v9  ;;  %418 = vmatpush1.bf16.msra.mxu1 %v1834_v15 }
  0x65   :  { %419 = vmatprep.subr.bf16.mxu1 %v1837_v16 }
  0x67   :  { %379 = vmatpush1.bf16.msra.mxu0 %v1826_v12 }
  0x68   :  { %380 = vmatprep.subr.bf16.mxu0 %v1828_v13  ;;  %420 = vmatpush1.bf16.msra.mxu1 %v1846_v19 }
  0x69   :  { %421 = vmatprep.subr.bf16.mxu1 %v1849_v20 }
  0x6b   :  { %381 = vmatpush1.bf16.msra.mxu0 %v1840_v17 }
  0x6c   :  { %382 = vmatprep.subr.bf16.mxu0 %v1843_v18  ;;  %422 = vmatpush1.bf16.msra.mxu1 %v1858_v23 }
  0x6d   :  { %423 = vmatprep.subr.bf16.mxu1 %v1861_v24 }
  0x6f   :  { %383 = vmatpush1.bf16.msra.mxu0 %v1852_v21 }
  0x70   :  { %384 = vmatprep.subr.bf16.mxu0 %v1854_v22  ;;  %424 = vmatpush1.bf16.msra.mxu1 %v1870_v27 }
  0x71   :  { %425 = vmatprep.subr.bf16.mxu1 %v1873_v28 }
  0x73   :  { %385 = vmatpush1.bf16.msra.mxu0 %v1864_v25 }
  0x74   :  { %386 = vmatprep.subr.bf16.mxu0 %v1867_v26  ;;  %426 = vmatpush1.bf16.msra.mxu1 %v1880_v30 }
  0x75   :  { %427 = vmatprep.subr.bf16.mxu1 %v1883_v31 }
  0x77   :  { %387 = vmatpush1.bf16.msra.mxu0 %v1876_v29 }
  0x78   :  { %488 = vmatprep.subr.bf16.mxu0 %v1795_v1  ;;  %428 = vmatpush1.bf16.msra.mxu1 %v1887_v32 }
  0x79   :  { %529 = vmatprep.subr.bf16.mxu1 %v1808_v6 }
 0x12d   :  { %v290_v35 = vpop.f32.mrb[0].mxu0  ;;  %v331_v44 = vpop.f32.mrb[0].mxu1 }
 0x12e   :  { %v338_v36 = vadd.f32 %v290_v35, %v92_v33  ;;  %v292_v37 = vpop.f32.mrb[1].mxu0  ;;  %v333_v45 = vpop.f32.mrb[1].mxu1  ;;  %v340_v51 = vadd.f32 %v331_v44, %v94_v49 }
 0x12f   :  { %v339_v38 = vadd.f32 %v292_v37, %v93_v34  ;;  %v294_v39 = vpop.f32.mrb[2].mxu0  ;;  %v341_v46 = vadd.f32 %v333_v45, %v95_v43  ;;  %v335_v47 = vpop.f32.mrb[2].mxu1  ;;  %v367_v37 = vld [vmem:[#allocation2 + $0x20] sm:$0xff] }
 0x130   :  { %v1309_v40 = vmul.f32 -1.442695, %v338_v36  ;;  %v295_v41 = vpop.f32.mrb[3].mxu0  ;;  %v336_v48 = vpop.f32.mrb[3].mxu1 }
 0x131   :  { %v1310_v42 = vmul.f32 -1.442695, %v339_v38  ;;  %v1311_v50 = vmul.f32 -1.442695, %v341_v46  ;;  %v368_v38 = vld [vmem:[#allocation2 + $0x28] sm:$0xff] }
 0x132   :  { %1471 = vpow2.f32 %v1309_v40 }
 0x133   :  { %1473 = vpow2.f32 %v1310_v42 }
 0x134   :  { %1475 = vpow2.f32 %v1311_v50 }
 0x135   :  { %1477 = vtanh.f32 %v340_v51  ;;  %v370_v51 = vld [vmem:[#allocation2 + $0x38] sm:$0xff] }
 0x13c   :  { %v1472_v52 = vpop.eup %1471 }
 0x13d   :  { %v1474_v53 = vpop.eup %1473  ;;  %v345_v54 = vadd.f32 1.0, %v1472_v52 }
 0x13e   :  { %v351_v55 = vadd.f32 1.0, %v1474_v53  ;;  %v1476_v56 = vpop.eup %1475  ;;  %v369_v53 = vld [vmem:[#allocation2 + $0x30] sm:$0xff] }
 0x13f   :  { %1479 = vrcp.f32 %v345_v54  ;;  %v1478_v57 = vpop.eup %1477  ;;  %v358_v59 = vadd.f32 1.0, %v1476_v56 }
 0x140   :  { %1481 = vrcp.f32 %v351_v55 }
 0x141   :  { %1483 = vrcp.f32 %v358_v59 }
 0x149   :  { %v1480_v58 = vpop.eup %1479 }
 0x14a   :  { %v1482_v60 = vpop.eup %1481  ;;  %v362_v61 = vmul.f32 %v1480_v58, %v1478_v57 }
 0x14b   :  { %v361_v62 = vmul.f32 0.0, %v1482_v60  ;;  %v1484_v33 = vpop.eup %1483 }
 0x14d   :  { %v1929_v63 = vadd.f32 %v362_v61, %v361_v62 }
 0x14f   :  { %1485 = vtanh.f32 %v1929_v63 }
 0x159   :  { %v1486_v34 = vpop.eup %1485 }
 0x15a   :  { %v365_v35 = vmul.f32 %v1486_v34, %v1484_v33 }
 0x15c   :  { %v371_v36 = vpack.c.bf16 %v365_v35, %v365_v35 }
 0x15e   :  { %405 = vmatmul.mubr.bf16.vlgmr.msra.gmra.mrb[4].mxu0 %v371_v36  ;;  %446 = vmatmul.mubr.bf16.vlgmr.msra.gmra.mrb[4].mxu1 %v371_v36 }
 0x15f   :  { %489 = vmatpush1.bf16.msra.mxu0 %v1797_v2  ;;  %530 = vmatpush1.bf16.msra.mxu1 %v1810_v7 }
 0x160   :  { %490 = vmatprep.subr.bf16.mxu0 %v1800_v3  ;;  %531 = vmatprep.subr.bf16.mxu1 %v1820_v10 }
 0x161   :  { %520 = vmatprep.mubr.bf16.mxu0 %v1727_v0  ;;  %561 = vmatprep.mubr.bf16.mxu1 %v1727_v0 }
 0x163   :  { %491 = vmatpush1.bf16.msra.mxu0 %v1803_v4  ;;  %532 = vmatpush1.bf16.msra.mxu1 %v1822_v11 }
 0x164   :  { %492 = vmatprep.subr.bf16.mxu0 %v1806_v5  ;;  %533 = vmatprep.subr.bf16.mxu1 %v1830_v14 }
 0x167   :  { %493 = vmatpush1.bf16.msra.mxu0 %v1813_v8  ;;  %534 = vmatpush1.bf16.msra.mxu1 %v1834_v15 }
 0x168   :  { %494 = vmatprep.subr.bf16.mxu0 %v1817_v9  ;;  %535 = vmatprep.subr.bf16.mxu1 %v1837_v16 }
 0x16b   :  { %495 = vmatpush1.bf16.msra.mxu0 %v1826_v12  ;;  %536 = vmatpush1.bf16.msra.mxu1 %v1846_v19 }
 0x16c   :  { %496 = vmatprep.subr.bf16.mxu0 %v1828_v13  ;;  %537 = vmatprep.subr.bf16.mxu1 %v1849_v20 }
 0x16f   :  { %497 = vmatpush1.bf16.msra.mxu0 %v1840_v17  ;;  %538 = vmatpush1.bf16.msra.mxu1 %v1858_v23 }
 0x170   :  { %498 = vmatprep.subr.bf16.mxu0 %v1843_v18  ;;  %539 = vmatprep.subr.bf16.mxu1 %v1861_v24 }
 0x173   :  { %499 = vmatpush1.bf16.msra.mxu0 %v1852_v21  ;;  %540 = vmatpush1.bf16.msra.mxu1 %v1870_v27 }
 0x174   :  { %500 = vmatprep.subr.bf16.mxu0 %v1854_v22  ;;  %541 = vmatprep.subr.bf16.mxu1 %v1873_v28 }
 0x177   :  { %501 = vmatpush1.bf16.msra.mxu0 %v1864_v25  ;;  %542 = vmatpush1.bf16.msra.mxu1 %v1880_v30 }
 0x178   :  { %502 = vmatprep.subr.bf16.mxu0 %v1867_v26  ;;  %543 = vmatprep.subr.bf16.mxu1 %v1883_v31 }
 0x17b   :  { %503 = vmatpush1.bf16.msra.mxu0 %v1876_v29  ;;  %544 = vmatpush1.bf16.msra.mxu1 %v1887_v32 }
 0x17c   :  { %604 = vmatprep.subr.bf16.mxu0 %v1795_v1  ;;  %645 = vmatprep.subr.bf16.mxu1 %v1808_v6 }
 0x231   :  { %v406_v39 = vpop.f32.mrb[4].mxu0  ;;  %v447_v40 = vpop.f32.mrb[4].mxu1 }
 0x232   :  { %v454_v41 = vadd.f32 %v406_v39, %v367_v37  ;;  %v408_v42 = vpop.f32.mrb[5].mxu0  ;;  %v449_v43 = vpop.f32.mrb[5].mxu1  ;;  %v456_v55 = vadd.f32 %v447_v40, %v369_v53 }
 0x233   :  { %v455_v44 = vadd.f32 %v408_v42, %v368_v38  ;;  %v410_v45 = vpop.f32.mrb[6].mxu0  ;;  %v451_v46 = vpop.f32.mrb[6].mxu1  ;;  %v457_v52 = vadd.f32 %v449_v43, %v370_v51  ;;  %v484_v42 = vld [vmem:[#allocation2 + $0x48] sm:$0xff] }
 0x234   :  { %v1312_v47 = vmul.f32 -1.442695, %v454_v41  ;;  %v411_v48 = vpop.f32.mrb[7].mxu0  ;;  %v452_v49 = vpop.f32.mrb[7].mxu1 }
 0x235   :  { %v1313_v50 = vmul.f32 -1.442695, %v455_v44  ;;  %v1314_v54 = vmul.f32 -1.442695, %v457_v52 }
 0x236   :  { %1487 = vpow2.f32 %v1312_v47 }
 0x237   :  { %1489 = vpow2.f32 %v1313_v50 }
 0x238   :  { %1491 = vpow2.f32 %v1314_v54 }
 0x239   :  { %1493 = vtanh.f32 %v456_v55  ;;  %v486_v55 = vld [vmem:[#allocation2 + $0x58] sm:$0xff] }
 0x240   :  { %v1488_v56 = vpop.eup %1487 }
 0x241   :  { %v1490_v57 = vpop.eup %1489  ;;  %v461_v58 = vadd.f32 1.0, %v1488_v56 }
 0x242   :  { %v467_v59 = vadd.f32 1.0, %v1490_v57  ;;  %v1492_v60 = vpop.eup %1491  ;;  %v485_v57 = vld [vmem:[#allocation2 + $0x50] sm:$0xff] }
 0x243   :  { %1495 = vrcp.f32 %v461_v58  ;;  %v1494_v61 = vpop.eup %1493  ;;  %v474_v35 = vadd.f32 1.0, %v1492_v60 }
 0x244   :  { %1497 = vrcp.f32 %v467_v59 }
 0x245   :  { %1499 = vrcp.f32 %v474_v35 }
 0x24d   :  { %v1496_v62 = vpop.eup %1495 }
 0x24e   :  { %v1498_v33 = vpop.eup %1497  ;;  %v478_v34 = vmul.f32 %v1496_v62, %v1494_v61 }
 0x24f   :  { %v477_v36 = vmul.f32 %v1498_v33, %v1929_v63  ;;  %v1500_v38 = vpop.eup %1499  ;;  %v483_v63 = vld [vmem:[#allocation2 + $0x40] sm:$0xff] }
 0x251   :  { %v1967_v37 = vadd.f32 %v478_v34, %v477_v36 }
 0x253   :  { %1501 = vtanh.f32 %v1967_v37 }
 0x25d   :  { %v1502_v39 = vpop.eup %1501 }
 0x25e   :  { %v481_v40 = vmul.f32 %v1502_v39, %v1500_v38 }
 0x260   :  { %v487_v41 = vpack.c.bf16 %v481_v40, %v481_v40 }
 0x262   :  { %521 = vmatmul.mubr.bf16.vlgmr.msra.gmra.mrb[8].mxu0 %v487_v41  ;;  %562 = vmatmul.mubr.bf16.vlgmr.msra.gmra.mrb[8].mxu1 %v487_v41 }
 0x263   :  { %605 = vmatpush1.bf16.msra.mxu0 %v1797_v2  ;;  %646 = vmatpush1.bf16.msra.mxu1 %v1810_v7 }
 0x264   :  { %606 = vmatprep.subr.bf16.mxu0 %v1800_v3  ;;  %647 = vmatprep.subr.bf16.mxu1 %v1820_v10 }
 0x265   :  { %636 = vmatprep.mubr.bf16.mxu0 %v1727_v0  ;;  %677 = vmatprep.mubr.bf16.mxu1 %v1727_v0 }
 0x267   :  { %607 = vmatpush1.bf16.msra.mxu0 %v1803_v4  ;;  %648 = vmatpush1.bf16.msra.mxu1 %v1822_v11 }
 0x268   :  { %608 = vmatprep.subr.bf16.mxu0 %v1806_v5  ;;  %649 = vmatprep.subr.bf16.mxu1 %v1830_v14 }
 0x26b   :  { %609 = vmatpush1.bf16.msra.mxu0 %v1813_v8  ;;  %650 = vmatpush1.bf16.msra.mxu1 %v1834_v15 }
 0x26c   :  { %610 = vmatprep.subr.bf16.mxu0 %v1817_v9  ;;  %651 = vmatprep.subr.bf16.mxu1 %v1837_v16 }
 0x26f   :  { %611 = vmatpush1.bf16.msra.mxu0 %v1826_v12  ;;  %652 = vmatpush1.bf16.msra.mxu1 %v1846_v19 }
 0x270   :  { %612 = vmatprep.subr.bf16.mxu0 %v1828_v13  ;;  %653 = vmatprep.subr.bf16.mxu1 %v1849_v20 }
 0x273   :  { %613 = vmatpush1.bf16.msra.mxu0 %v1840_v17  ;;  %654 = vmatpush1.bf16.msra.mxu1 %v1858_v23 }
 0x274   :  { %614 = vmatprep.subr.bf16.mxu0 %v1843_v18  ;;  %655 = vmatprep.subr.bf16.mxu1 %v1861_v24 }
 0x277   :  { %615 = vmatpush1.bf16.msra.mxu0 %v1852_v21  ;;  %656 = vmatpush1.bf16.msra.mxu1 %v1870_v27 }
 0x278   :  { %616 = vmatprep.subr.bf16.mxu0 %v1854_v22  ;;  %657 = vmatprep.subr.bf16.mxu1 %v1873_v28 }
 0x27b   :  { %617 = vmatpush1.bf16.msra.mxu0 %v1864_v25  ;;  %658 = vmatpush1.bf16.msra.mxu1 %v1880_v30 }
 0x27c   :  { %618 = vmatprep.subr.bf16.mxu0 %v1867_v26  ;;  %659 = vmatprep.subr.bf16.mxu1 %v1883_v31 }
 0x27f   :  { %619 = vmatpush1.bf16.msra.mxu0 %v1876_v29  ;;  %660 = vmatpush1.bf16.msra.mxu1 %v1887_v32 }
 0x280   :  { %720 = vmatprep.subr.bf16.mxu0 %v1795_v1  ;;  %761 = vmatprep.subr.bf16.mxu1 %v1808_v6 }
 0x335   :  { %v522_v43 = vpop.f32.mrb[8].mxu0  ;;  %v563_v44 = vpop.f32.mrb[8].mxu1 }
 0x336   :  { %v570_v45 = vadd.f32 %v522_v43, %v483_v63  ;;  %v524_v46 = vpop.f32.mrb[9].mxu0  ;;  %v565_v47 = vpop.f32.mrb[9].mxu1  ;;  %v572_v59 = vadd.f32 %v563_v44, %v485_v57 }
 0x337   :  { %v571_v48 = vadd.f32 %v524_v46, %v484_v42  ;;  %v526_v49 = vpop.f32.mrb[10].mxu0  ;;  %v567_v50 = vpop.f32.mrb[10].mxu1  ;;  %v573_v56 = vadd.f32 %v565_v47, %v486_v55  ;;  %v600_v46 = vld [vmem:[#allocation2 + $0x68] sm:$0xff] }
 0x338   :  { %v1315_v51 = vmul.f32 -1.442695, %v570_v45  ;;  %v527_v52 = vpop.f32.mrb[11].mxu0  ;;  %v568_v53 = vpop.f32.mrb[11].mxu1 }
 0x339   :  { %v1316_v54 = vmul.f32 -1.442695, %v571_v48  ;;  %v1317_v58 = vmul.f32 -1.442695, %v573_v56 }
 0x33a   :  { %1503 = vpow2.f32 %v1315_v51 }
 0x33b   :  { %1505 = vpow2.f32 %v1316_v54 }
 0x33c   :  { %1507 = vpow2.f32 %v1317_v58 }
 0x33d   :  { %1509 = vtanh.f32 %v572_v59  ;;  %v602_v59 = vld [vmem:[#allocation2 + $0x78] sm:$0xff] }
 0x344   :  { %v1504_v60 = vpop.eup %1503 }
 0x345   :  { %v1506_v61 = vpop.eup %1505  ;;  %v577_v62 = vadd.f32 1.0, %v1504_v60 }
 0x346   :  { %v583_v33 = vadd.f32 1.0, %v1506_v61  ;;  %v1508_v34 = vpop.eup %1507  ;;  %v601_v61 = vld [vmem:[#allocation2 + $0x70] sm:$0xff] }
 0x347   :  { %1511 = vrcp.f32 %v577_v62  ;;  %v1510_v35 = vpop.eup %1509  ;;  %v590_v40 = vadd.f32 1.0, %v1508_v34 }
 0x348   :  { %1513 = vrcp.f32 %v583_v33 }
 0x349   :  { %1515 = vrcp.f32 %v590_v40 }
 0x351   :  { %v1512_v36 = vpop.eup %1511 }
 0x352   :  { %v1514_v38 = vpop.eup %1513  ;;  %v594_v39 = vmul.f32 %v1512_v36, %v1510_v35 }
 0x353   :  { %v593_v41 = vmul.f32 %v1514_v38, %v1967_v37  ;;  %v1516_v42 = vpop.eup %1515  ;;  %v599_v37 = vld [vmem:[#allocation2 + $0x60] sm:$0xff] }
 0x355   :  { %v2005_v63 = vadd.f32 %v594_v39, %v593_v41 }
 0x357   :  { %1517 = vtanh.f32 %v2005_v63 }
 0x361   :  { %v1518_v43 = vpop.eup %1517 }
 0x362   :  { %v597_v44 = vmul.f32 %v1518_v43, %v1516_v42 }
 0x364   :  { %v603_v45 = vpack.c.bf16 %v597_v44, %v597_v44 }
 0x366   :  { %637 = vmatmul.mubr.bf16.vlgmr.msra.gmra.mrb[12].mxu0 %v603_v45  ;;  %678 = vmatmul.mubr.bf16.vlgmr.msra.gmra.mrb[12].mxu1 %v603_v45 }
 0x367   :  { %721 = vmatpush1.bf16.msra.mxu0 %v1797_v2  ;;  %762 = vmatpush1.bf16.msra.mxu1 %v1810_v7 }
 0x368   :  { %722 = vmatprep.subr.bf16.mxu0 %v1800_v3  ;;  %763 = vmatprep.subr.bf16.mxu1 %v1820_v10 }
 0x369   :  { %752 = vmatprep.mubr.bf16.mxu0 %v1727_v0  ;;  %793 = vmatprep.mubr.bf16.mxu1 %v1727_v0 }
 0x36b   :  { %723 = vmatpush1.bf16.msra.mxu0 %v1803_v4  ;;  %764 = vmatpush1.bf16.msra.mxu1 %v1822_v11 }
 0x36c   :  { %724 = vmatprep.subr.bf16.mxu0 %v1806_v5  ;;  %765 = vmatprep.subr.bf16.mxu1 %v1830_v14 }
 0x36f   :  { %725 = vmatpush1.bf16.msra.mxu0 %v1813_v8  ;;  %766 = vmatpush1.bf16.msra.mxu1 %v1834_v15 }
 0x370   :  { %726 = vmatprep.subr.bf16.mxu0 %v1817_v9  ;;  %767 = vmatprep.subr.bf16.mxu1 %v1837_v16 }
 0x373   :  { %727 = vmatpush1.bf16.msra.mxu0 %v1826_v12  ;;  %768 = vmatpush1.bf16.msra.mxu1 %v1846_v19 }
 0x374   :  { %728 = vmatprep.subr.bf16.mxu0 %v1828_v13  ;;  %769 = vmatprep.subr.bf16.mxu1 %v1849_v20 }
 0x377   :  { %729 = vmatpush1.bf16.msra.mxu0 %v1840_v17  ;;  %770 = vmatpush1.bf16.msra.mxu1 %v1858_v23 }
 0x378   :  { %730 = vmatprep.subr.bf16.mxu0 %v1843_v18  ;;  %771 = vmatprep.subr.bf16.mxu1 %v1861_v24 }
 0x37b   :  { %731 = vmatpush1.bf16.msra.mxu0 %v1852_v21  ;;  %772 = vmatpush1.bf16.msra.mxu1 %v1870_v27 }
 0x37c   :  { %732 = vmatprep.subr.bf16.mxu0 %v1854_v22  ;;  %773 = vmatprep.subr.bf16.mxu1 %v1873_v28 }
 0x37f   :  { %733 = vmatpush1.bf16.msra.mxu0 %v1864_v25  ;;  %774 = vmatpush1.bf16.msra.mxu1 %v1880_v30 }
 0x380   :  { %734 = vmatprep.subr.bf16.mxu0 %v1867_v26  ;;  %775 = vmatprep.subr.bf16.mxu1 %v1883_v31 }
 0x383   :  { %735 = vmatpush1.bf16.msra.mxu0 %v1876_v29  ;;  %776 = vmatpush1.bf16.msra.mxu1 %v1887_v32 }
 0x384   :  { %836 = vmatprep.subr.bf16.mxu0 %v1795_v1  ;;  %877 = vmatprep.subr.bf16.mxu1 %v1808_v6 }
 0x439   :  { %v638_v47 = vpop.f32.mrb[12].mxu0  ;;  %v679_v48 = vpop.f32.mrb[12].mxu1 }
 0x43a   :  { %v686_v49 = vadd.f32 %v638_v47, %v599_v37  ;;  %v640_v50 = vpop.f32.mrb[13].mxu0  ;;  %v681_v51 = vpop.f32.mrb[13].mxu1  ;;  %v688_v33 = vadd.f32 %v679_v48, %v601_v61 }
 0x43b   :  { %v687_v52 = vadd.f32 %v640_v50, %v600_v46  ;;  %v642_v53 = vpop.f32.mrb[14].mxu0  ;;  %v683_v54 = vpop.f32.mrb[14].mxu1  ;;  %v689_v60 = vadd.f32 %v681_v51, %v602_v59  ;;  %v716_v50 = vld [vmem:[#allocation2 + $0x88] sm:$0xff] }
 0x43c   :  { %v1318_v55 = vmul.f32 -1.442695, %v686_v49  ;;  %v643_v56 = vpop.f32.mrb[15].mxu0  ;;  %v684_v57 = vpop.f32.mrb[15].mxu1 }
 0x43d   :  { %v1319_v58 = vmul.f32 -1.442695, %v687_v52  ;;  %v1320_v62 = vmul.f32 -1.442695, %v689_v60 }
 0x43e   :  { %1519 = vpow2.f32 %v1318_v55 }
 0x43f   :  { %1521 = vpow2.f32 %v1319_v58 }
 0x440   :  { %1523 = vpow2.f32 %v1320_v62 }
 0x441   :  { %1525 = vtanh.f32 %v688_v33  ;;  %v718_v33 = vld [vmem:[#allocation2 + $0x98] sm:$0xff] }
 0x448   :  { %v1520_v34 = vpop.eup %1519 }
 0x449   :  { %v1522_v35 = vpop.eup %1521  ;;  %v693_v36 = vadd.f32 1.0, %v1520_v34  ;;  %v717_v34 = vld [vmem:[#allocation2 + $0x90] sm:$0xff] }
 0x44a   :  { %v699_v38 = vadd.f32 1.0, %v1522_v35  ;;  %v1524_v39 = vpop.eup %1523 }
 0x44b   :  { %1527 = vrcp.f32 %v693_v36  ;;  %v1526_v40 = vpop.eup %1525  ;;  %v706_v44 = vadd.f32 1.0, %v1524_v39 }
 0x44c   :  { %1529 = vrcp.f32 %v699_v38 }
 0x44d   :  { %1531 = vrcp.f32 %v706_v44 }
 0x455   :  { %v1528_v41 = vpop.eup %1527 }
 0x456   :  { %v1530_v42 = vpop.eup %1529  ;;  %v710_v43 = vmul.f32 %v1528_v41, %v1526_v40 }
 0x457   :  { %v709_v45 = vmul.f32 %v1530_v42, %v2005_v63  ;;  %v1532_v46 = vpop.eup %1531  ;;  %v715_v63 = vld [vmem:[#allocation2 + $0x80] sm:$0xff] }
 0x459   :  { %v2043_v37 = vadd.f32 %v710_v43, %v709_v45 }
 0x45b   :  { %1533 = vtanh.f32 %v2043_v37 }
 0x465   :  { %v1534_v47 = vpop.eup %1533 }
 0x466   :  { %v713_v48 = vmul.f32 %v1534_v47, %v1532_v46 }
 0x468   :  { %v719_v49 = vpack.c.bf16 %v713_v48, %v713_v48 }
 0x46a   :  { %753 = vmatmul.mubr.bf16.vlgmr.msra.gmra.mrb[16].mxu0 %v719_v49  ;;  %794 = vmatmul.mubr.bf16.vlgmr.msra.gmra.mrb[16].mxu1 %v719_v49 }
 0x46b   :  { %837 = vmatpush1.bf16.msra.mxu0 %v1797_v2  ;;  %878 = vmatpush1.bf16.msra.mxu1 %v1810_v7 }
 0x46c   :  { %838 = vmatprep.subr.bf16.mxu0 %v1800_v3  ;;  %879 = vmatprep.subr.bf16.mxu1 %v1820_v10 }
 0x46d   :  { %868 = vmatprep.mubr.bf16.mxu0 %v1727_v0  ;;  %909 = vmatprep.mubr.bf16.mxu1 %v1727_v0 }
 0x46f   :  { %839 = vmatpush1.bf16.msra.mxu0 %v1803_v4  ;;  %880 = vmatpush1.bf16.msra.mxu1 %v1822_v11 }
 0x470   :  { %840 = vmatprep.subr.bf16.mxu0 %v1806_v5  ;;  %881 = vmatprep.subr.bf16.mxu1 %v1830_v14 }
 0x473   :  { %841 = vmatpush1.bf16.msra.mxu0 %v1813_v8  ;;  %882 = vmatpush1.bf16.msra.mxu1 %v1834_v15 }
 0x474   :  { %842 = vmatprep.subr.bf16.mxu0 %v1817_v9  ;;  %883 = vmatprep.subr.bf16.mxu1 %v1837_v16 }
 0x477   :  { %843 = vmatpush1.bf16.msra.mxu0 %v1826_v12  ;;  %884 = vmatpush1.bf16.msra.mxu1 %v1846_v19 }
 0x478   :  { %844 = vmatprep.subr.bf16.mxu0 %v1828_v13  ;;  %885 = vmatprep.subr.bf16.mxu1 %v1849_v20 }
 0x47b   :  { %845 = vmatpush1.bf16.msra.mxu0 %v1840_v17  ;;  %886 = vmatpush1.bf16.msra.mxu1 %v1858_v23 }
 0x47c   :  { %846 = vmatprep.subr.bf16.mxu0 %v1843_v18  ;;  %887 = vmatprep.subr.bf16.mxu1 %v1861_v24 }
 0x47f   :  { %847 = vmatpush1.bf16.msra.mxu0 %v1852_v21  ;;  %888 = vmatpush1.bf16.msra.mxu1 %v1870_v27 }
 0x480   :  { %848 = vmatprep.subr.bf16.mxu0 %v1854_v22  ;;  %889 = vmatprep.subr.bf16.mxu1 %v1873_v28 }
 0x483   :  { %849 = vmatpush1.bf16.msra.mxu0 %v1864_v25  ;;  %890 = vmatpush1.bf16.msra.mxu1 %v1880_v30 }
 0x484   :  { %850 = vmatprep.subr.bf16.mxu0 %v1867_v26  ;;  %891 = vmatprep.subr.bf16.mxu1 %v1883_v31 }
 0x487   :  { %851 = vmatpush1.bf16.msra.mxu0 %v1876_v29  ;;  %892 = vmatpush1.bf16.msra.mxu1 %v1887_v32 }
 0x488   :  { %952 = vmatprep.subr.bf16.mxu0 %v1795_v1  ;;  %993 = vmatprep.subr.bf16.mxu1 %v1808_v6 }
 0x53d   :  { %v754_v51 = vpop.f32.mrb[16].mxu0  ;;  %v795_v52 = vpop.f32.mrb[16].mxu1 }
 0x53e   :  { %v802_v53 = vadd.f32 %v754_v51, %v715_v63  ;;  %v756_v54 = vpop.f32.mrb[17].mxu0  ;;  %v797_v55 = vpop.f32.mrb[17].mxu1  ;;  %v804_v36 = vadd.f32 %v795_v52, %v717_v34  ;;  %v1602_v34 = vld [vmem:[#allocation5 + $0x40] ss:$16 sps:$4 sm:$0xff]  }
 0x53f   :  { %v803_v56 = vadd.f32 %v756_v54, %v716_v50  ;;  %v758_v57 = vpop.f32.mrb[18].mxu0  ;;  %v799_v58 = vpop.f32.mrb[18].mxu1  ;;  %v805_v1 = vadd.f32 %v797_v55, %v718_v33  ;;  %v1600_v33 = vld [vmem:[#allocation5 + $0x44] ss:$16 sps:$4 sm:$0xff]  }
 0x540   :  { %v1321_v59 = vmul.f32 -1.442695, %v802_v53  ;;  %v759_v60 = vpop.f32.mrb[19].mxu0  ;;  %v800_v61 = vpop.f32.mrb[19].mxu1  ;;  %v1594_v57 = vld [vmem:[#allocation5] ss:$16 sps:$4 sm:$0xff]  }
 0x541   :  { %v1322_v62 = vmul.f32 -1.442695, %v803_v56  ;;  %v1323_v35 = vmul.f32 -1.442695, %v805_v1  ;;  %v1595_v58 = vld [vmem:[#allocation5 + $0x8] ss:$16 sps:$4 sm:$0xff]  }
 0x542   :  { %1535 = vpow2.f32 %v1321_v59  ;;  %v1596_v59 = vld [vmem:[#allocation5 + $0x24] ss:$16 sps:$4 sm:$0xff]   ;;  %v1597_v60 = vld [vmem:[#allocation5 + $0x2c] ss:$16 sps:$4 sm:$0xff]   ;;  %v1598_v61 = vld [vmem:[#allocation5 + $0x20] ss:$16 sps:$4 sm:$0xff]  }
 0x543   :  { %1537 = vpow2.f32 %v1322_v62  ;;  %v1599_v62 = vld [vmem:[#allocation5 + $0x28] ss:$16 sps:$4 sm:$0xff]   ;;  %v1601_v1 = vld [vmem:[#allocation5 + $0x4c] ss:$16 sps:$4 sm:$0xff]  }
 0x544   :  { %1539 = vpow2.f32 %v1323_v35  ;;  %v1603_v35 = vld [vmem:[#allocation5 + $0x48] ss:$16 sps:$4 sm:$0xff]  }
 0x545   :  { %1541 = vtanh.f32 %v804_v36  ;;  %v1604_v36 = vld [vmem:[#allocation5 + $0x64] ss:$16 sps:$4 sm:$0xff]  }
 0x54c   :  { %v1536_v38 = vpop.eup %1535 }
 0x54d   :  { %v1538_v39 = vpop.eup %1537  ;;  %v809_v40 = vadd.f32 1.0, %v1536_v38  ;;  %v1605_v38 = vld [vmem:[#allocation5 + $0x6c] ss:$16 sps:$4 sm:$0xff]  }
 0x54e   :  { %v815_v41 = vadd.f32 1.0, %v1538_v39  ;;  %v1540_v42 = vpop.eup %1539  ;;  %v1606_v39 = vld [vmem:[#allocation5 + $0x60] ss:$16 sps:$4 sm:$0xff]  }
 0x54f   :  { %1543 = vrcp.f32 %v809_v40  ;;  %v1542_v43 = vpop.eup %1541  ;;  %v822_v47 = vadd.f32 1.0, %v1540_v42  ;;  %v1607_v40 = vld [vmem:[#allocation5 + $0x68] ss:$16 sps:$4 sm:$0xff]   ;;  %v1610_v42 = vld [vmem:[#allocation5 + $0x80] ss:$16 sps:$4 sm:$0xff]  }
 0x550   :  { %1545 = vrcp.f32 %v815_v41  ;;  %v1609_v41 = vld [vmem:[#allocation5 + $0x8c] ss:$16 sps:$4 sm:$0xff]  }
 0x551   :  { %1547 = vrcp.f32 %v822_v47  ;;  %v1615_v47 = vld [vmem:[#allocation5 + $0xa8] ss:$16 sps:$4 sm:$0xff]  }
 0x559   :  { %v1544_v44 = vpop.eup %1543 }
 0x55a   :  { %v1546_v45 = vpop.eup %1545  ;;  %v826_v46 = vmul.f32 %v1544_v44, %v1542_v43  ;;  %v1611_v43 = vld [vmem:[#allocation5 + $0x88] ss:$16 sps:$4 sm:$0xff]   ;;  %v1612_v44 = vld [vmem:[#allocation5 + $0xa4] ss:$16 sps:$4 sm:$0xff]  }
 0x55b   :  { %v825_v48 = vmul.f32 %v1546_v45, %v2043_v37  ;;  %v1548_v63 = vpop.eup %1547  ;;  %v1613_v45 = vld [vmem:[#allocation5 + $0xac] ss:$16 sps:$4 sm:$0xff]  }
 0x55d   :  { %v2081_v49 = vadd.f32 %v826_v46, %v825_v48  ;;  %v1614_v46 = vld [vmem:[#allocation5 + $0xa0] ss:$16 sps:$4 sm:$0xff]   ;;  %v1616_v48 = vld [vmem:[#allocation5 + $0xc4] ss:$16 sps:$4 sm:$0xff]  }
 0x55f   :  { %1549 = vtanh.f32 %v2081_v49 }
 0x569   :  { %v1550_v50 = vpop.eup %1549 }
 0x56a   :  { %v829_v51 = vmul.f32 %v1550_v50, %v1548_v63  ;;  %v1618_v63 = vld [vmem:[#allocation5 + $0xc0] ss:$16 sps:$4 sm:$0xff]   ;;  %v1619_v50 = vld [vmem:[#allocation5 + $0xc8] ss:$16 sps:$4 sm:$0xff]  }
 0x56c   :  { %v835_v52 = vpack.c.bf16 %v829_v51, %v829_v51  ;;  %v1620_v51 = vld [vmem:[#allocation5 + $0xe4] ss:$16 sps:$4 sm:$0xff]  }
 0x56e   :  { %869 = vmatmul.mubr.bf16.vlgmr.msra.gmra.mrb[20].mxu0 %v835_v52  ;;  %910 = vmatmul.mubr.bf16.vlgmr.msra.gmra.mrb[20].mxu1 %v835_v52  ;;  %v1621_v52 = vld [vmem:[#allocation5 + $0xec] ss:$16 sps:$4 sm:$0xff]  }
 0x56f   :  { %953 = vmatpush1.bf16.msra.mxu0 %v1797_v2  ;;  %994 = vmatpush1.bf16.msra.mxu1 %v1810_v7  ;;  %v1593_v2 = vld [vmem:[#allocation5 + $0x4] ss:$16 sps:$4 sm:$0xff]  }
 0x570   :  { %954 = vmatprep.subr.bf16.mxu0 %v1800_v3  ;;  %995 = vmatprep.subr.bf16.mxu1 %v1820_v10  ;;  %v831_v3 = vld [vmem:[#allocation2 + $0xa0] sm:$0xff] }
 0x571   :  { %984 = vmatprep.mubr.bf16.mxu0 %v1727_v0  ;;  %1025 = vmatprep.mubr.bf16.mxu1 %v1727_v0 }
 0x573   :  { %955 = vmatpush1.bf16.msra.mxu0 %v1803_v4  ;;  %996 = vmatpush1.bf16.msra.mxu1 %v1822_v11  ;;  %v832_v4 = vld [vmem:[#allocation2 + $0xa8] sm:$0xff] }
 0x574   :  { %956 = vmatprep.subr.bf16.mxu0 %v1806_v5  ;;  %997 = vmatprep.subr.bf16.mxu1 %v1830_v14 }
 0x577   :  { %957 = vmatpush1.bf16.msra.mxu0 %v1813_v8  ;;  %998 = vmatpush1.bf16.msra.mxu1 %v1834_v15 }
 0x578   :  { %958 = vmatprep.subr.bf16.mxu0 %v1817_v9  ;;  %999 = vmatprep.subr.bf16.mxu1 %v1837_v16 }
 0x57b   :  { %959 = vmatpush1.bf16.msra.mxu0 %v1826_v12  ;;  %1000 = vmatpush1.bf16.msra.mxu1 %v1846_v19 }
 0x57c   :  { %960 = vmatprep.subr.bf16.mxu0 %v1828_v13  ;;  %1001 = vmatprep.subr.bf16.mxu1 %v1849_v20  ;;  %v833_v20 = vld [vmem:[#allocation2 + $0xb0] sm:$0xff] }
 0x57f   :  { %961 = vmatpush1.bf16.msra.mxu0 %v1840_v17  ;;  %1002 = vmatpush1.bf16.msra.mxu1 %v1858_v23 }
 0x580   :  { %962 = vmatprep.subr.bf16.mxu0 %v1843_v18  ;;  %1003 = vmatprep.subr.bf16.mxu1 %v1861_v24  ;;  %v834_v18 = vld [vmem:[#allocation2 + $0xb8] sm:$0xff] }
 0x583   :  { %963 = vmatpush1.bf16.msra.mxu0 %v1852_v21  ;;  %1004 = vmatpush1.bf16.msra.mxu1 %v1870_v27 }
 0x584   :  { %964 = vmatprep.subr.bf16.mxu0 %v1854_v22  ;;  %1005 = vmatprep.subr.bf16.mxu1 %v1873_v28 }
 0x587   :  { %965 = vmatpush1.bf16.msra.mxu0 %v1864_v25  ;;  %1006 = vmatpush1.bf16.msra.mxu1 %v1880_v30 }
 0x588   :  { %966 = vmatprep.subr.bf16.mxu0 %v1867_v26  ;;  %1007 = vmatprep.subr.bf16.mxu1 %v1883_v31 }
 0x58b   :  { %967 = vmatpush1.bf16.msra.mxu0 %v1876_v29  ;;  %1008 = vmatpush1.bf16.msra.mxu1 %v1887_v32 }
 0x58c   :  { %1067 = vmatprep.subr.bf16.mxu0 %v1593_v2  ;;  %1108 = vmatprep.subr.bf16.mxu1 %v1808_v6  ;;  %v1622_v2 = vld [vmem:[#allocation5 + $0xe0] ss:$16 sps:$4 sm:$0xff]  }
 0x641   :  { %v870_v5 = vpop.f32.mrb[20].mxu0  ;;  %v911_v7 = vpop.f32.mrb[20].mxu1 }
 0x642   :  { %v918_v8 = vadd.f32 %v870_v5, %v831_v3  ;;  %v872_v9 = vpop.f32.mrb[21].mxu0  ;;  %v913_v10 = vpop.f32.mrb[21].mxu1  ;;  %v920_v21 = vadd.f32 %v911_v7, %v833_v20  ;;  %v1623_v3 = vld [vmem:[#allocation5 + $0xe8] ss:$16 sps:$4 sm:$0xff]  }
 0x643   :  { %v919_v11 = vadd.f32 %v872_v9, %v832_v4  ;;  %v874_v12 = vpop.f32.mrb[22].mxu0  ;;  %v915_v13 = vpop.f32.mrb[22].mxu1  ;;  %v921_v19 = vadd.f32 %v913_v10, %v834_v18  ;;  %v947_v4 = vld [vmem:[#allocation2 + $0xc0] sm:$0xff]  ;;  %v948_v5 = vld [vmem:[#allocation2 + $0xc8] sm:$0xff] }
 0x644   :  { %v1324_v14 = vmul.f32 -1.442695, %v918_v8  ;;  %v875_v15 = vpop.f32.mrb[23].mxu0  ;;  %v916_v16 = vpop.f32.mrb[23].mxu1 }
 0x645   :  { %v1325_v17 = vmul.f32 -1.442695, %v919_v11  ;;  %v1326_v6 = vmul.f32 -1.442695, %v921_v19  ;;  %v950_v19 = vld [vmem:[#allocation2 + $0xd8] sm:$0xff] }
 0x646   :  { %1551 = vpow2.f32 %v1324_v14 }
 0x647   :  { %1553 = vpow2.f32 %v1325_v17 }
 0x648   :  { %1555 = vpow2.f32 %v1326_v6  ;;  %v949_v6 = vld [vmem:[#allocation2 + $0xd0] sm:$0xff] }
 0x649   :  { %1557 = vtanh.f32 %v920_v21 }
 0x650   :  { %v1552_v22 = vpop.eup %1551 }
 0x651   :  { %v1554_v23 = vpop.eup %1553  ;;  %v925_v24 = vadd.f32 1.0, %v1552_v22 }
 0x652   :  { %v931_v25 = vadd.f32 1.0, %v1554_v23  ;;  %v1556_v26 = vpop.eup %1555 }
 0x653   :  { %1559 = vrcp.f32 %v925_v24  ;;  %v1558_v27 = vpop.eup %1557  ;;  %v938_v31 = vadd.f32 1.0, %v1556_v26 }
 0x654   :  { %1561 = vrcp.f32 %v931_v25 }
 0x655   :  { %1563 = vrcp.f32 %v938_v31 }
 0x65d   :  { %v1560_v28 = vpop.eup %1559 }
 0x65e   :  { %v1562_v29 = vpop.eup %1561  ;;  %v942_v30 = vmul.f32 %v1560_v28, %v1558_v27 }
 0x65f   :  { %v941_v32 = vmul.f32 %v1562_v29, %v2081_v49  ;;  %v1564_v53 = vpop.eup %1563  ;;  %v1617_v49 = vld [vmem:[#allocation5 + $0xcc] ss:$16 sps:$4 sm:$0xff]  }
 0x661   :  { %v2118_v37 = vadd.f32 %v942_v30, %v941_v32 }
 0x663   :  { %1565 = vtanh.f32 %v2118_v37 }
 0x66d   :  { %v1566_v54 = vpop.eup %1565 }
 0x66e   :  { %v945_v55 = vmul.f32 %v1566_v54, %v1564_v53 }
 0x670   :  { %v951_v56 = vpack.c.bf16 %v945_v55, %v945_v55 }
 0x672   :  { %985 = vmatmul.mubr.bf16.vlgmr.msra.gmra.mrb[24].mxu0 %v951_v56  ;;  %1026 = vmatmul.mubr.bf16.vlgmr.msra.gmra.mrb[24].mxu1 %v951_v56 }
 0x673   :  { %1068 = vmatpush1.bf16.msra.mxu0 %v1594_v57  ;;  %1109 = vmatpush1.bf16.msra.mxu1 %v1595_v58 }
 0x674   :  { %1069 = vmatprep.subr.bf16.mxu0 %v1596_v59  ;;  %1110 = vmatprep.subr.bf16.mxu1 %v1597_v60  ;;  %v1167_v59 = vld [vmem:[#allocation7] sm:$0xff]  ;;  %v1168_v60 = vld [vmem:[#allocation7 + $0x8] sm:$0xff] }
 0x675   :  { %1099 = vmatprep.mubr.bf16.mxu0 %v1727_v0  ;;  %1140 = vmatprep.mubr.bf16.mxu1 %v1727_v0  ;;  %v1608_v0 = vld [vmem:[#allocation5 + $0x84] ss:$16 sps:$4 sm:$0xff]  }
 0x677   :  { %1070 = vmatpush1.bf16.msra.mxu0 %v1598_v61  ;;  %1111 = vmatpush1.bf16.msra.mxu1 %v1599_v62  ;;  %v1386_v61 = vpack.c.bf16 %v1168_v60, %v1167_v59  ;;  %v1728_v62 = vmov 0.0|0.0  }
 0x678   :  { %1071 = vmatprep.subr.bf16.mxu0 %v1600_v33  ;;  %1112 = vmatprep.subr.bf16.mxu1 %v1601_v1  ;;  %v1169_v33 = vld [vmem:[#allocation7 + $0x10] sm:$0xff] }
 0x67b   :  { %1072 = vmatpush1.bf16.msra.mxu0 %v1602_v34  ;;  %1113 = vmatpush1.bf16.msra.mxu1 %v1603_v35  ;;  %v1171_v34 = vld [vmem:[#allocation7 + $0x20] sm:$0xff]  ;;  %v1172_v35 = vld [vmem:[#allocation7 + $0x28] sm:$0xff] }
 0x67c   :  { %1073 = vmatprep.subr.bf16.mxu0 %v1604_v36  ;;  %1114 = vmatprep.subr.bf16.mxu1 %v1605_v38  ;;  %v1392_v36 = vpack.c.bf16 %v1172_v35, %v1171_v34  ;;  %v1173_v38 = vld [vmem:[#allocation7 + $0x30] sm:$0xff] }
 0x67f   :  { %1074 = vmatpush1.bf16.msra.mxu0 %v1606_v39  ;;  %1115 = vmatpush1.bf16.msra.mxu1 %v1607_v40  ;;  %v1174_v39 = vld [vmem:[#allocation7 + $0x38] sm:$0xff] }
 0x680   :  { %1075 = vmatprep.subr.bf16.mxu0 %v1608_v0  ;;  %1116 = vmatprep.subr.bf16.mxu1 %v1609_v41  ;;  %v1395_v40 = vpack.c.bf16 %v1174_v39, %v1173_v38  ;;  %v1175_v0 = vld [vmem:[#allocation7 + $0x40] sm:$0xff]  ;;  %v1176_v41 = vld [vmem:[#allocation7 + $0x48] sm:$0xff] }
 0x683   :  { %1076 = vmatpush1.bf16.msra.mxu0 %v1610_v42  ;;  %1117 = vmatpush1.bf16.msra.mxu1 %v1611_v43  ;;  %v1398_v42 = vpack.c.bf16 %v1176_v41, %v1175_v0  ;;  %v1177_v43 = vld [vmem:[#allocation7 + $0x50] sm:$0xff] }
 0x684   :  { %1077 = vmatprep.subr.bf16.mxu0 %v1612_v44  ;;  %1118 = vmatprep.subr.bf16.mxu1 %v1613_v45  ;;  %v1178_v44 = vld [vmem:[#allocation7 + $0x58] sm:$0xff] }
 0x685   :  { %v1401_v45 = vpack.c.bf16 %v1178_v44, %v1177_v43 }
 0x687   :  { %1078 = vmatpush1.bf16.msra.mxu0 %v1614_v46  ;;  %1119 = vmatpush1.bf16.msra.mxu1 %v1615_v47  ;;  %v1730_v46 = vmov 0.0   ;;  %v1179_v47 = vld [vmem:[#allocation7 + $0x60] sm:$0xff] }
 0x688   :  { %1079 = vmatprep.subr.bf16.mxu0 %v1616_v48  ;;  %1120 = vmatprep.subr.bf16.mxu1 %v1617_v49  ;;  %v1180_v48 = vld [vmem:[#allocation7 + $0x68] sm:$0xff] }
 0x689   :  { %v1404_v49 = vpack.c.bf16 %v1180_v48, %v1179_v47 }
 0x68b   :  { %1080 = vmatpush1.bf16.msra.mxu0 %v1618_v63  ;;  %1121 = vmatpush1.bf16.msra.mxu1 %v1619_v50  ;;  %v1181_v63 = vld [vmem:[#allocation7 + $0x70] sm:$0xff]  ;;  %v1182_v50 = vld [vmem:[#allocation7 + $0x78] sm:$0xff] }
 0x68c   :  { %1081 = vmatprep.subr.bf16.mxu0 %v1620_v51  ;;  %1122 = vmatprep.subr.bf16.mxu1 %v1621_v52  ;;  %v1407_v51 = vpack.c.bf16 %v1182_v50, %v1181_v63  ;;  %v1063_v52 = vld [vmem:[#allocation2 + $0xe0] sm:$0xff] }
 0x68f   :  { %1082 = vmatpush1.bf16.msra.mxu0 %v1622_v2  ;;  %1123 = vmatpush1.bf16.msra.mxu1 %v1623_v3  ;;  %v1064_v2 = vld [vmem:[#allocation2 + $0xe8] sm:$0xff] }
 0x690   :  { %1385 = vmatprep.subr.bf16.mxu0 %v1728_v62 }
 0x745   :  { %v986_v7 = vpop.f32.mrb[24].mxu0  ;;  %v1027_v8 = vpop.f32.mrb[24].mxu1 }
 0x746   :  { %v1034_v9 = vadd.f32 %v986_v7, %v947_v4  ;;  %v988_v10 = vpop.f32.mrb[25].mxu0  ;;  %v1029_v11 = vpop.f32.mrb[25].mxu1  ;;  %v1036_v22 = vadd.f32 %v1027_v8, %v949_v6 }
 0x747   :  { %v1035_v12 = vadd.f32 %v988_v10, %v948_v5  ;;  %v990_v13 = vpop.f32.mrb[26].mxu0  ;;  %v1031_v14 = vpop.f32.mrb[26].mxu1  ;;  %v1037_v20 = vadd.f32 %v1029_v11, %v950_v19 }
 0x748   :  { %v1327_v15 = vmul.f32 -1.442695, %v1034_v9  ;;  %v991_v16 = vpop.f32.mrb[27].mxu0  ;;  %v1032_v17 = vpop.f32.mrb[27].mxu1 }
 0x749   :  { %v1328_v18 = vmul.f32 -1.442695, %v1035_v12  ;;  %v1329_v21 = vmul.f32 -1.442695, %v1037_v20  ;;  %v1065_v16 = vld [vmem:[#allocation2 + $0xf0] sm:$0xff] }
 0x74a   :  { %1567 = vpow2.f32 %v1327_v15 }
 0x74b   :  { %1569 = vpow2.f32 %v1328_v18 }
 0x74c   :  { %1571 = vpow2.f32 %v1329_v21 }
 0x74d   :  { %1573 = vtanh.f32 %v1036_v22 }
 0x754   :  { %v1568_v23 = vpop.eup %1567 }
 0x755   :  { %v1570_v24 = vpop.eup %1569  ;;  %v1041_v25 = vadd.f32 1.0, %v1568_v23 }
 0x756   :  { %v1047_v26 = vadd.f32 1.0, %v1570_v24  ;;  %v1572_v27 = vpop.eup %1571 }
 0x757   :  { %1575 = vrcp.f32 %v1041_v25  ;;  %v1574_v28 = vpop.eup %1573  ;;  %v1054_v32 = vadd.f32 1.0, %v1572_v27  ;;  %v1332_v27 = vld [vmem:[%s2146_s3] ss:$0 sm:$0xff] }
 0x758   :  { %1577 = vrcp.f32 %v1047_v26 }
 0x759   :  { %1579 = vrcp.f32 %v1054_v32 }
 0x761   :  { %v1576_v29 = vpop.eup %1575 }
 0x762   :  { %v1578_v30 = vpop.eup %1577  ;;  %v1058_v31 = vmul.f32 %v1576_v29, %v1574_v28 }
 0x763   :  { %v1057_v53 = vmul.f32 %v1578_v30, %v2118_v37  ;;  %v1580_v55 = vpop.eup %1579  ;;  %v1170_v37 = vld [vmem:[#allocation7 + $0x18] sm:$0xff] }
 0x764   :  { %v1389_v1 = vpack.c.bf16 %v1170_v37, %v1169_v33 }
 0x765   :  { %v2124_v54 = vadd.f32 %v1058_v31, %v1057_v53 }
 0x767   :  { %1581 = vtanh.f32 %v2124_v54 }
 0x771   :  { %v1582_v56 = vpop.eup %1581 }
 0x772   :  { %v1061_v57 = vmul.f32 %v1582_v56, %v1580_v55 }
 0x774   :  { %v1066_v58 = vpack.c.bf16 %v1061_v57, %v1061_v57 }
 0x776   :  { %1100 = vmatmul.mubr.bf16.vlgmr.msra.gmra.mrb[28].mxu0 %v1066_v58  ;;  %1141 = vmatmul.mubr.bf16.vlgmr.msra.gmra.mrb[28].mxu1 %v1066_v58 }
 0x777   :  { %1387 = vmatpush3.bf16.msra.mxu0 %v1386_v61  ;;  %1382 = vmatprep.mubr.msk.f32.mxu0 %vm1729_vm0, %v1730_v46 }
 0x778   :  { %1388 = vmatprep.subr.bf16.mxu0 %v1728_v62 }
 0x77b   :  { %1390 = vmatpush3.bf16.msra.mxu0 %v1389_v1 }
 0x77c   :  { %1391 = vmatprep.subr.bf16.mxu0 %v1728_v62 }
 0x77f   :  { %1393 = vmatpush3.bf16.msra.mxu0 %v1392_v36 }
 0x780   :  { %1394 = vmatprep.subr.bf16.mxu0 %v1728_v62 }
 0x783   :  { %1396 = vmatpush3.bf16.msra.mxu0 %v1395_v40 }
 0x784   :  { %1397 = vmatprep.subr.bf16.mxu0 %v1728_v62 }
 0x787   :  { %1399 = vmatpush3.bf16.msra.mxu0 %v1398_v42 }
 0x788   :  { %1400 = vmatprep.subr.bf16.mxu0 %v1728_v62 }
 0x78b   :  { %1402 = vmatpush3.bf16.msra.mxu0 %v1401_v45 }
 0x78c   :  { %1403 = vmatprep.subr.bf16.mxu0 %v1728_v62 }
 0x78f   :  { %1405 = vmatpush3.bf16.msra.mxu0 %v1404_v49 }
 0x790   :  { %1406 = vmatprep.subr.bf16.mxu0 %v1728_v62 }
 0x793   :  { %1408 = vmatpush3.bf16.msra.mxu0 %v1407_v51 }
 0x849   :  { %v1101_v3 = vpop.f32.mrb[28].mxu0  ;;  %v1142_v4 = vpop.f32.mrb[28].mxu1 }
 0x84a   :  { %v1148_v5 = vadd.f32 %v1101_v3, %v1063_v52  ;;  %v1103_v7 = vpop.f32.mrb[29].mxu0  ;;  %v1144_v8 = vpop.f32.mrb[29].mxu1  ;;  %v1150_v17 = vadd.f32 %v1142_v4, %v1065_v16 }
 0x84b   :  { %v1149_v9 = vadd.f32 %v1103_v7, %v1064_v2  ;;  %v1105_v10 = vpop.f32.mrb[30].mxu0  ;;  %v1145_v11 = vpop.f32.mrb[30].mxu1 }
 0x84c   :  { %v1330_v12 = vmul.f32 -1.442695, %v1148_v5  ;;  %v1106_v13 = vpop.f32.mrb[31].mxu0  ;;  %v1146_v14 = vpop.f32.mrb[31].mxu1 }
 0x84d   :  { %v1331_v15 = vmul.f32 -1.442695, %v1149_v9 }
 0x84e   :  { %1583 = vpow2.f32 %v1330_v12 }
 0x84f   :  { %1585 = vpow2.f32 %v1331_v15 }
 0x850   :  { %1587 = vtanh.f32 %v1150_v17 }
 0x858   :  { %v1584_v18 = vpop.eup %1583 }
 0x859   :  { %v1586_v19 = vpop.eup %1585  ;;  %v1154_v20 = vadd.f32 1.0, %v1584_v18 }
 0x85a   :  { %v1160_v6 = vadd.f32 1.0, %v1586_v19  ;;  %v1588_v21 = vpop.eup %1587 }
 0x85b   :  { %1589 = vrcp.f32 %v1154_v20 }
 0x85c   :  { %1591 = vrcp.f32 %v1160_v6 }
 0x865   :  { %v1590_v22 = vpop.eup %1589 }
 0x866   :  { %v1592_v23 = vpop.eup %1591  ;;  %v1165_v24 = vmul.f32 %v1590_v22, %v1588_v21 }
 0x867   :  { %v1164_v25 = vmul.f32 %v1592_v23, %v2124_v54 }
 0x869   :  { %v1166_v26 = vadd.f32 %v1165_v24, %v1164_v25 }
 0x86b   :  { %1383 = vmatmul.mubr.f32.vlgmr.msra.gmra.mrb[32].mxu0 %v1166_v26 }
 0x93e   :  { %v1256_v28 = vpop.f32.mrb[32].mxu0 }
 0x93f   :  { %v1257_v29 = vadd.f32 %v1332_v27, %v1256_v28  ;;  %v1384_v30 = vpop.f32.mrb[33].mxu0 }
 0x941   :  { %1260 = vst [vmem:[#allocation8] sm:$0xff] %v1257_v29 }
 0x942   :  { %1701 = shalt.err (!%p1698_p0)
}
 0x943   :  { %s1702_s9 = scalar_lea.hbm %s2147_s4, 128 }
 0x944   :  { %p1703_p1 = scmp.ne.s32.totalorder %s2147_s4, %s1702_s9  ;;  %p1706_p2 = scmp.lt.u32.totalorder %s1702_s9, %s2147_s4 }
 0x946   :  { %p1708_p3 = pnand %p1706_p2, %p1703_p1 }
 0x948   :  { %1711 = shalt.err (!%p1708_p3)
}
 0x949   :  { %1270 = dma.vmem_to_hbm [thread:$0]  %s1268_s5, 128, %s2147_s4, [#allocation4]  }
 0x94a   :  { %1716 = dma.done.wait [#allocation4], 128  }
 0x94b   :  { %1717 = vsyncadd [#allocation4], 4294967168 }
 0x94c   :  { %1274 = vsyncpa [#allocation3], 1 }
 0x94d   :  { %1275 = vsyncpa [#allocation6], 1 }
 0x94e   :  { %1276 = vsyncpa [#allocation4], 1 }

</bundles_post_ra>
